<compile_context>
chip_gen: v7x
topology: tpu7x:2x2x1
jax: 0.10.0
libtpu: 0.0.40
codegen_flags: <defaults>
</compile_context>

<pallas_src>
import functools

import jax
import jax.numpy as jnp
from jax import lax
from jax.experimental import pallas as pl
from jax.experimental.pallas import tpu as pltpu

# ---- synthetic "args" ----------------------------------------------------------------
VOCAB = 50
EMB = 32             # embedding_size
RNN_DIM = 32         # args.rnn_dim (H); bi-directional width is 2H
FC_DIM = 16          # args.fc_dim
T_CONTENT, T_QUESTION, T_OPTION = 8, 4, 4
T_TOTAL = T_CONTENT + T_QUESTION + T_OPTION          # 16
BATCH = 2
B2P = 8              # front+behind batch (2*BATCH = 4) padded to a full sublane tile
OUT_LANES = 128      # lane-dense output width (unmasked vst)
H2 = 2 * RNN_DIM     # 64
G8 = 8 * RNN_DIM     # 256  fused gate width [i|f|2g|o], each 2H wide


# ---------------------------------------------------------------------------------------
# Pallas kernel
# ---------------------------------------------------------------------------------------
def rmidp_kernel(emb_ref, wx_ref, bx_ref, wh_ref, whead_ref, bhead_ref,
                 out_ref, xp_ref):
    bp = out_ref.shape[0]                   # padded batch rows (8)
    T = emb_ref.shape[0] // bp              # time steps (16)
    h2 = wh_ref.shape[0]                    # 2*H (fwd|bwd halves), 64
    half = wh_ref.shape[1] // 2             # 128: [i|f] lanes / [2g|o] lanes

    dot = functools.partial(jnp.dot, preferred_element_type=jnp.float32)

    # ---- hoisted input projections: ONE wide matmul, bias folded, lane-dense scratch --
    xp_ref[...] = dot(emb_ref[...], wx_ref[...]) + bx_ref[...]      # (T*bp, 256)

    # fused recurrent (block-diagonal fwd|bwd) weights, resident across the unrolled loop
    # NOTE: explicit pltpu.matmul_push_rhs RHS pinning skipped for lowering robustness.
    wh = wh_ref[...]                                                # (64, 256)

    zeros = jnp.zeros((bp, h2), jnp.float32)

    # ---- fused fwd+bwd LSTM recurrence (PyTorch gate order i, f, g, o) ----------------
    def step(t, carry):
        h, c, acc = carry
        r = pl.ds(pl.multiple_of(t * bp, bp), bp)                   # sublane-aligned slice
        pre = xp_ref[r, :] + dot(h, wh)                             # (bp, 256), 1 MXU issue
        s_if = jax.nn.sigmoid(pre[:, 0:half])                       # full 128-lane sigmoid
        s_go = jax.nn.sigmoid(pre[:, half:])                        # [sigmoid(2g) | sigmoid(o)]
        gi = s_if[:, 0:h2]
        gf = s_if[:, h2:]
        gg = 2.0 * s_go[:, 0:h2] - 1.0                              # tanh(g) via 2*sig(2g)-1
        go = s_go[:, h2:]
        c_new = gf * c + gi * gg
        h_new = go * jnp.tanh(c_new)
        return h_new, c_new, acc + h_new

    _, _, acc = lax.fori_loop(0, T, step, (zeros, zeros, zeros), unroll=True)

    # ---- mean-pool over time -> folded FC+head; single lane-dense (bp, 128) store ----
    pooled = acc * (1.0 / T)                                        # (bp, 2H) = [mean_f|mean_b]
    wide = dot(pooled, whead_ref[...]) + bhead_ref[...]             # (bp, 128); cols 0,1 = logit
    col = lax.broadcasted_iota(jnp.int32, wide.shape, 1)
    out_ref[...] = jnp.where(col == 0, wide,
                             jnp.where(col == 1, jax.nn.sigmoid(wide), 0.0))


def rmidp_pallas(emb_packed, kparams):
    """emb_packed: (T*B2P, 2E) f32, row = t*B2P + b. Returns (B2P, 128) f32."""
    vmem = pl.BlockSpec(memory_space=pltpu.MemorySpace.VMEM)
    cost = pl.CostEstimate(flops=8_519_680, transcendentals=41_984,
                           bytes_accessed=202_240)
    return pl.pallas_call(
        rmidp_kernel,
        out_shape=jax.ShapeDtypeStruct((B2P, OUT_LANES), jnp.float32),
        in_specs=[vmem] * (1 + len(kparams)),
        out_specs=vmem,
        scratch_shapes=[pltpu.VMEM((T_TOTAL * B2P, G8), jnp.float32)],
        cost_estimate=cost,
    )(emb_packed, *kparams)


# ---------------------------------------------------------------------------------------
# Forward (matches RMIDP.forward): one jit, one kernel launch for front+behind
# ---------------------------------------------------------------------------------------
@jax.jit
def rmidp_forward(emb_weight, kparams, x_fb_content, x_fb_question, x_fb_option):
    """Returns ((f_logits, b_logits), (f_scores, b_scores)), each of shape (B,)."""
    def embed(x_c, x_q, x_o):
        return jnp.concatenate(
            [jnp.take(emb_weight, x_c, axis=0),
             jnp.take(emb_weight, x_q, axis=0),
             jnp.take(emb_weight, x_o, axis=0)], axis=1)            # (B, T, E)

    e_f = embed(x_fb_content[0], x_fb_question[0], x_fb_option[0])
    e_b = embed(x_fb_content[1], x_fb_question[1], x_fb_option[1])
    emb_all = jnp.concatenate([e_f, e_b], axis=0)                   # (2B, T, E)
    nb = emb_all.shape[0]

    # pack [x_t | x_{T-1-t}] per row so one recurrence drives both directions
    emb2 = jnp.concatenate([emb_all, emb_all[:, ::-1, :]], axis=-1)     # (2B, T, 2E)
    emb2 = jnp.transpose(emb2, (1, 0, 2))                           # (T, 2B, 2E) time-major
    emb2 = jnp.pad(emb2, ((0, 0), (0, B2P - nb), (0, 0)))           # pad batch to 8 rows
    emb2 = emb2.reshape(T_TOTAL * B2P, 2 * EMB)                     # (128, 64)

    out = rmidp_pallas(emb2, kparams)                               # (B2P, 128)
    logits = out[:nb, 0]
    scores = out[:nb, 1]
    B = nb // 2
    return ((logits[:B], logits[B:]), (scores[:B], scores[B:]))     # torch .squeeze() -> (B,)


# ---------------------------------------------------------------------------------------
# Parameters (shapes from RMIDP.__init__) and repacking to the fused kernel layout
# ---------------------------------------------------------------------------------------
def make_params(key):
    ks = jax.random.split(key, 13)
    H, E, F = RNN_DIM, EMB, FC_DIM
    u = lambda k, shape, lim: jax.random.uniform(k, shape, jnp.float32, -lim, lim)

    emb_weight = jax.random.uniform(ks[0], (VOCAB, E), jnp.float32, -1.0, 1.0)

    k_rnn = 1.0 / (H ** 0.5)
    # forward direction (weights stored transposed: (in, 4H) / (H, 4H); gate order i,f,g,o)
    wih_f = u(ks[1], (E, 4 * H), k_rnn)
    whh_f = u(ks[2], (H, 4 * H), k_rnn)
    b_f = u(ks[3], (1, 4 * H), k_rnn) + u(ks[4], (1, 4 * H), k_rnn)   # b_ih + b_hh
    # backward direction
    wih_b = u(ks[5], (E, 4 * H), k_rnn)
    whh_b = u(ks[6], (H, 4 * H), k_rnn)
    b_b = u(ks[7], (1, 4 * H), k_rnn) + u(ks[8], (1, 4 * H), k_rnn)

    k_fc = 1.0 / ((2 * H) ** 0.5)
    wfc = u(ks[9], (2 * H, F), k_fc)
    bfc = u(ks[10], (1, F), k_fc)
    k_out = 1.0 / (F ** 0.5)
    wout = u(ks[11], (F, 1), k_out)
    bout = u(ks[12], (1, 1), k_out)

    return emb_weight, (wih_f, whh_f, b_f, wih_b, whh_b, b_b, wfc, bfc, wout, bout)


def prepare_kernel_params(params):
    """Repack per-direction (PyTorch-layout) weights into the fused kernel layout."""
    wih_f, whh_f, b_f, wih_b, whh_b, b_b, wfc, bfc, wout, bout = params
    H = whh_f.shape[0]

    def gate(w, g):                      # (in, 4H) -> gate-g columns (in, H)
        return w[:, g * H:(g + 1) * H]

    def blockdiag(a, b):
        za = jnp.zeros((a.shape[0], b.shape[1]), jnp.float32)
        zb = jnp.zeros((b.shape[0], a.shape[1]), jnp.float32)
        return jnp.concatenate(
            [jnp.concatenate([a, za], axis=1),
             jnp.concatenate([zb, b], axis=1)], axis=0)

    wx = [blockdiag(gate(wih_f, g), gate(wih_b, g)) for g in range(4)]    # (2E, 2H) each
    wh = [blockdiag(gate(whh_f, g), gate(whh_b, g)) for g in range(4)]    # (2H, 2H) each
    bx = [jnp.concatenate([gate(b_f, g), gate(b_b, g)], axis=1) for g in range(4)]

    # tanh-via-sigmoid: pre-scale the cell ("g", PyTorch gate index 2) columns by 2 so
    # the kernel can apply one full-width sigmoid over [2g|o] and fix up with 2s-1.
    wx[2] = 2.0 * wx[2]
    wh[2] = 2.0 * wh[2]
    bx[2] = 2.0 * bx[2]

    # fused lane layout: [ i (0:2H) | f (2H:4H) | 2g (4H:6H) | o (6H:8H) ]
    wx_fused = jnp.concatenate(wx, axis=1)     # (2E, 8H)
    wh_fused = jnp.concatenate(wh, axis=1)     # (2H, 8H)
    bx_fused = jnp.concatenate(bx, axis=1)     # (1, 8H)

    # fold FC + output head (linear-linear, no activation between them in the module)
    w_fold = wfc @ wout                        # (2H, 1)
    b_fold = bfc @ wout + bout                 # (1, 1)
    whead = jnp.zeros((2 * H, OUT_LANES), jnp.float32)
    whead = whead.at[:, 0].set(w_fold[:, 0]).at[:, 1].set(w_fold[:, 0])
    bhead = jnp.zeros((1, OUT_LANES), jnp.float32)
    bhead = bhead.at[0, 0].set(b_fold[0, 0]).at[0, 1].set(b_fold[0, 0])

    return (wx_fused, bx_fused, wh_fused, whead, bhead)


# ---------------------------------------------------------------------------------------
# Independent pure-JAX reference (unfused, per-direction) for validation
# ---------------------------------------------------------------------------------------
def _lstm_direction_ref(emb, w_ih, w_hh, b, reverse):
    B, T, _ = emb.shape
    H = w_hh.shape[0]
    h = jnp.zeros((B, H), jnp.float32)
    c = jnp.zeros((B, H), jnp.float32)
    acc = jnp.zeros((B, H), jnp.float32)
    order = range(T - 1, -1, -1) if reverse else range(T)
    for t in order:
        gates = emb[:, t, :] @ w_ih + h @ w_hh + b
        i = jax.nn.sigmoid(gates[:, 0 * H:1 * H])
        f = jax.nn.sigmoid(gates[:, 1 * H:2 * H])
        g = jnp.tanh(gates[:, 2 * H:3 * H])
        o = jax.nn.sigmoid(gates[:, 3 * H:4 * H])
        c = f * c + i * g
        h = o * jnp.tanh(c)
        acc = acc + h
    return acc / float(T)


def sub_network_ref(emb_seq, params):
    wih_f, whh_f, b_f, wih_b, whh_b, b_b, wfc, bfc, wout, bout = params
    mean_f = _lstm_direction_ref(emb_seq, wih_f, whh_f, b_f, reverse=False)
    mean_b = _lstm_direction_ref(emb_seq, wih_b, whh_b, b_b, reverse=True)
    pooled = jnp.concatenate([mean_f, mean_b], axis=-1)
    fc = pooled @ wfc + bfc
    logits = (fc @ wout + bout)[:, 0]
    return logits, jax.nn.sigmoid(logits)


# ---------------------------------------------------------------------------------------
if __name__ == "__main__":
    key = jax.random.PRNGKey(0)
    kp, k1, k2, k3, k4, k5, k6 = jax.random.split(key, 7)
    emb_weight, params = make_params(kp)
    kparams = prepare_kernel_params(params)

    # front & behind token-id tensors (pairs, as in the PyTorch forward)
    x_fb_content = (jax.random.randint(k1, (BATCH, T_CONTENT), 0, VOCAB, jnp.int32),
                    jax.random.randint(k2, (BATCH, T_CONTENT), 0, VOCAB, jnp.int32))
    x_fb_question = (jax.random.randint(k3, (BATCH, T_QUESTION), 0, VOCAB, jnp.int32),
                     jax.random.randint(k4, (BATCH, T_QUESTION), 0, VOCAB, jnp.int32))
    x_fb_option = (jax.random.randint(k5, (BATCH, T_OPTION), 0, VOCAB, jnp.int32),
                   jax.random.randint(k6, (BATCH, T_OPTION), 0, VOCAB, jnp.int32))

    logits, scores = rmidp_forward(emb_weight, kparams,
                                   x_fb_content, x_fb_question, x_fb_option)
    jax.block_until_ready(logits)
    jax.block_until_ready(scores)

    # correctness check against the independent (unfused) pure-JAX reference
    for side in range(2):
        emb_seq = jnp.concatenate(
            [jnp.take(emb_weight, x_fb_content[side], axis=0),
             jnp.take(emb_weight, x_fb_question[side], axis=0),
             jnp.take(emb_weight, x_fb_option[side], axis=0)], axis=1)
        ref_lg, ref_sc = sub_network_ref(emb_seq, params)
        assert jnp.allclose(logits[side], ref_lg, atol=1e-3, rtol=1e-3), (logits[side], ref_lg)
        assert jnp.allclose(scores[side], ref_sc, atol=1e-3, rtol=1e-3), (scores[side], ref_sc)

    print("KERNEL_OK")
</pallas_src>

<mosaic_0001>
module attributes {stable_mosaic.version = 11 : i64} {
  func.func @rmidp_kernel(%arg0: memref<128x64xf32, #tpu.memory_space<vmem>>, %arg1: memref<64x256xf32, #tpu.memory_space<vmem>>, %arg2: memref<1x256xf32, #tpu.memory_space<vmem>>, %arg3: memref<64x256xf32, #tpu.memory_space<vmem>>, %arg4: memref<64x128xf32, #tpu.memory_space<vmem>>, %arg5: memref<1x128xf32, #tpu.memory_space<vmem>>, %arg6: memref<8x128xf32, #tpu.memory_space<vmem>>, %arg7: memref<128x256xf32, #tpu.memory_space<vmem>>) attributes {dimension_semantics = [], scalar_prefetch = 0 : i64, scratch_operands = 1 : i64, tpu.core_type = #tpu.core_type<tc>} {
    %c0 = arith.constant 0 : index
    %c0_0 = arith.constant 0 : index
    %0 = vector.load %arg0[%c0, %c0_0] : memref<128x64xf32, #tpu.memory_space<vmem>>, vector<128x64xf32>
    %c0_1 = arith.constant 0 : index
    %c0_2 = arith.constant 0 : index
    %1 = vector.load %arg1[%c0_1, %c0_2] : memref<64x256xf32, #tpu.memory_space<vmem>>, vector<64x256xf32>
    %cst = arith.constant dense<0.000000e+00> : vector<128x256xf32>
    %2 = tpu.matmul %0, %1, %cst {dimension_numbers = #tpu.dot_dimension_numbers<[1], [0], [0], [1], [0, 0, 1, 1], [], []>} : vector<128x64xf32>, vector<64x256xf32>, vector<128x256xf32> -> vector<128x256xf32>
    %c0_3 = arith.constant 0 : index
    %c0_4 = arith.constant 0 : index
    %3 = vector.load %arg2[%c0_3, %c0_4] : memref<1x256xf32, #tpu.memory_space<vmem>>, vector<1x256xf32>
    %4 = vector.broadcast %3 : vector<1x256xf32> to vector<128x256xf32>
    %5 = arith.addf %2, %4 : vector<128x256xf32>
    %c0_5 = arith.constant 0 : index
    %c0_6 = arith.constant 0 : index
    %6 = vector.load %arg7[%c0_5, %c0_6] : memref<128x256xf32, #tpu.memory_space<vmem>>, vector<128x256xf32>
    tpu.vector_store %arg7[%c0_5, %c0_6], %5 {strides = array<i32>} : memref<128x256xf32, #tpu.memory_space<vmem>>, vector<128x256xf32>,
    %c0_7 = arith.constant 0 : index
    %c0_8 = arith.constant 0 : index
    %7 = vector.load %arg3[%c0_7, %c0_8] : memref<64x256xf32, #tpu.memory_space<vmem>>, vector<64x256xf32>
    %cst_9 = arith.constant 0.000000e+00 : f32
    %8 = vector.broadcast %cst_9 : f32 to vector<8x64xf32>
    %c0_i32 = arith.constant 0 : i32
    %c8_i32 = arith.constant 8 : i32
    %9 = arith.muli %c0_i32, %c8_i32 : i32
    %10 = tpu.assume_multiple %9, 8 : i32
    %11 = arith.index_cast %10 : i32 to index
    %c0_10 = arith.constant 0 : index
    %12 = vector.load %arg7[%11, %c0_10] : memref<128x256xf32, #tpu.memory_space<vmem>>, vector<8x256xf32>
    %cst_11 = arith.constant dense<0.000000e+00> : vector<8x256xf32>
    %13 = tpu.matmul %8, %7, %cst_11 {dimension_numbers = #tpu.dot_dimension_numbers<[1], [0], [0], [1], [0, 0, 1, 1], [], []>} : vector<8x64xf32>, vector<64x256xf32>, vector<8x256xf32> -> vector<8x256xf32>
    %14 = arith.addf %12, %13 : vector<8x256xf32>
    %15 = vector.extract_strided_slice %14 {offsets = [0, 0], sizes = [8, 128], strides = [1, 1]} : vector<8x256xf32> to vector<8x128xf32>
    %16 = arith.negf %15 : vector<8x128xf32>
    %17 = math.exp %16 : vector<8x128xf32>
    %cst_12 = arith.constant 1.000000e+00 : f32
    %18 = vector.broadcast %cst_12 : f32 to vector<8x128xf32>
    %19 = arith.addf %18, %17 : vector<8x128xf32>
    %20 = arith.divf %18, %19 : vector<8x128xf32>
    %21 = vector.extract_strided_slice %14 {offsets = [0, 128], sizes = [8, 128], strides = [1, 1]} : vector<8x256xf32> to vector<8x128xf32>
    %22 = arith.negf %21 : vector<8x128xf32>
    %23 = math.exp %22 : vector<8x128xf32>
    %cst_13 = arith.constant 1.000000e+00 : f32
    %24 = vector.broadcast %cst_13 : f32 to vector<8x128xf32>
    %25 = arith.addf %24, %23 : vector<8x128xf32>
    %26 = arith.divf %24, %25 : vector<8x128xf32>
    %27 = vector.extract_strided_slice %20 {offsets = [0, 0], sizes = [8, 64], strides = [1, 1]} : vector<8x128xf32> to vector<8x64xf32>
    %28 = vector.extract_strided_slice %20 {offsets = [0, 64], sizes = [8, 64], strides = [1, 1]} : vector<8x128xf32> to vector<8x64xf32>
    %29 = vector.extract_strided_slice %26 {offsets = [0, 0], sizes = [8, 64], strides = [1, 1]} : vector<8x128xf32> to vector<8x64xf32>
    %cst_14 = arith.constant 2.000000e+00 : f32
    %30 = vector.broadcast %cst_14 : f32 to vector<8x64xf32>
    %31 = arith.mulf %30, %29 : vector<8x64xf32>
    %cst_15 = arith.constant 1.000000e+00 : f32
    %32 = vector.broadcast %cst_15 : f32 to vector<8x64xf32>
    %33 = arith.subf %31, %32 : vector<8x64xf32>
    %34 = vector.extract_strided_slice %26 {offsets = [0, 64], sizes = [8, 64], strides = [1, 1]} : vector<8x128xf32> to vector<8x64xf32>
    %35 = arith.mulf %28, %8 : vector<8x64xf32>
    %36 = arith.mulf %27, %33 : vector<8x64xf32>
    %37 = arith.addf %35, %36 : vector<8x64xf32>
    %38 = math.tanh %37 : vector<8x64xf32>
    %39 = arith.mulf %34, %38 : vector<8x64xf32>
    %40 = arith.addf %8, %39 : vector<8x64xf32>
    %c1_i32 = arith.constant 1 : i32
    %c8_i32_16 = arith.constant 8 : i32
    %41 = arith.muli %c1_i32, %c8_i32_16 : i32
    %42 = tpu.assume_multiple %41, 8 : i32
    %43 = arith.index_cast %42 : i32 to index
    %c0_17 = arith.constant 0 : index
    %44 = vector.load %arg7[%43, %c0_17] : memref<128x256xf32, #tpu.memory_space<vmem>>, vector<8x256xf32>
    %cst_18 = arith.constant dense<0.000000e+00> : vector<8x256xf32>
    %45 = tpu.matmul %39, %7, %cst_18 {dimension_numbers = #tpu.dot_dimension_numbers<[1], [0], [0], [1], [0, 0, 1, 1], [], []>} : vector<8x64xf32>, vector<64x256xf32>, vector<8x256xf32> -> vector<8x256xf32>
    %46 = arith.addf %44, %45 : vector<8x256xf32>
    %47 = vector.extract_strided_slice %46 {offsets = [0, 0], sizes = [8, 128], strides = [1, 1]} : vector<8x256xf32> to vector<8x128xf32>
    %48 = arith.negf %47 : vector<8x128xf32>
    %49 = math.exp %48 : vector<8x128xf32>
    %cst_19 = arith.constant 1.000000e+00 : f32
    %50 = vector.broadcast %cst_19 : f32 to vector<8x128xf32>
    %51 = arith.addf %50, %49 : vector<8x128xf32>
    %52 = arith.divf %50, %51 : vector<8x128xf32>
    %53 = vector.extract_strided_slice %46 {offsets = [0, 128], sizes = [8, 128], strides = [1, 1]} : vector<8x256xf32> to vector<8x128xf32>
    %54 = arith.negf %53 : vector<8x128xf32>
    %55 = math.exp %54 : vector<8x128xf32>
    %cst_20 = arith.constant 1.000000e+00 : f32
    %56 = vector.broadcast %cst_20 : f32 to vector<8x128xf32>
    %57 = arith.addf %56, %55 : vector<8x128xf32>
    %58 = arith.divf %56, %57 : vector<8x128xf32>
    %59 = vector.extract_strided_slice %52 {offsets = [0, 0], sizes = [8, 64], strides = [1, 1]} : vector<8x128xf32> to vector<8x64xf32>
    %60 = vector.extract_strided_slice %52 {offsets = [0, 64], sizes = [8, 64], strides = [1, 1]} : vector<8x128xf32> to vector<8x64xf32>
    %61 = vector.extract_strided_slice %58 {offsets = [0, 0], sizes = [8, 64], strides = [1, 1]} : vector<8x128xf32> to vector<8x64xf32>
    %cst_21 = arith.constant 2.000000e+00 : f32
    %62 = vector.broadcast %cst_21 : f32 to vector<8x64xf32>
    %63 = arith.mulf %62, %61 : vector<8x64xf32>
    %cst_22 = arith.constant 1.000000e+00 : f32
    %64 = vector.broadcast %cst_22 : f32 to vector<8x64xf32>
    %65 = arith.subf %63, %64 : vector<8x64xf32>
    %66 = vector.extract_strided_slice %58 {offsets = [0, 64], sizes = [8, 64], strides = [1, 1]} : vector<8x128xf32> to vector<8x64xf32>
    %67 = arith.mulf %60, %37 : vector<8x64xf32>
    %68 = arith.mulf %59, %65 : vector<8x64xf32>
    %69 = arith.addf %67, %68 : vector<8x64xf32>
    %70 = math.tanh %69 : vector<8x64xf32>
    %71 = arith.mulf %66, %70 : vector<8x64xf32>
    %72 = arith.addf %40, %71 : vector<8x64xf32>
    %c2_i32 = arith.constant 2 : i32
    %c8_i32_23 = arith.constant 8 : i32
    %73 = arith.muli %c2_i32, %c8_i32_23 : i32
    %74 = tpu.assume_multiple %73, 8 : i32
    %75 = arith.index_cast %74 : i32 to index
    %c0_24 = arith.constant 0 : index
    %76 = vector.load %arg7[%75, %c0_24] : memref<128x256xf32, #tpu.memory_space<vmem>>, vector<8x256xf32>
    %cst_25 = arith.constant dense<0.000000e+00> : vector<8x256xf32>
    %77 = tpu.matmul %71, %7, %cst_25 {dimension_numbers = #tpu.dot_dimension_numbers<[1], [0], [0], [1], [0, 0, 1, 1], [], []>} : vector<8x64xf32>, vector<64x256xf32>, vector<8x256xf32> -> vector<8x256xf32>
    %78 = arith.addf %76, %77 : vector<8x256xf32>
    %79 = vector.extract_strided_slice %78 {offsets = [0, 0], sizes = [8, 128], strides = [1, 1]} : vector<8x256xf32> to vector<8x128xf32>
    %80 = arith.negf %79 : vector<8x128xf32>
    %81 = math.exp %80 : vector<8x128xf32>
    %cst_26 = arith.constant 1.000000e+00 : f32
    %82 = vector.broadcast %cst_26 : f32 to vector<8x128xf32>
    %83 = arith.addf %82, %81 : vector<8x128xf32>
    %84 = arith.divf %82, %83 : vector<8x128xf32>
    %85 = vector.extract_strided_slice %78 {offsets = [0, 128], sizes = [8, 128], strides = [1, 1]} : vector<8x256xf32> to vector<8x128xf32>
    %86 = arith.negf %85 : vector<8x128xf32>
    %87 = math.exp %86 : vector<8x128xf32>
    %cst_27 = arith.constant 1.000000e+00 : f32
    %88 = vector.broadcast %cst_27 : f32 to vector<8x128xf32>
    %89 = arith.addf %88, %87 : vector<8x128xf32>
    %90 = arith.divf %88, %89 : vector<8x128xf32>
    %91 = vector.extract_strided_slice %84 {offsets = [0, 0], sizes = [8, 64], strides = [1, 1]} : vector<8x128xf32> to vector<8x64xf32>
    %92 = vector.extract_strided_slice %84 {offsets = [0, 64], sizes = [8, 64], strides = [1, 1]} : vector<8x128xf32> to vector<8x64xf32>
    %93 = vector.extract_strided_slice %90 {offsets = [0, 0], sizes = [8, 64], strides = [1, 1]} : vector<8x128xf32> to vector<8x64xf32>
    %cst_28 = arith.constant 2.000000e+00 : f32
    %94 = vector.broadcast %cst_28 : f32 to vector<8x64xf32>
    %95 = arith.mulf %94, %93 : vector<8x64xf32>
    %cst_29 = arith.constant 1.000000e+00 : f32
    %96 = vector.broadcast %cst_29 : f32 to vector<8x64xf32>
    %97 = arith.subf %95, %96 : vector<8x64xf32>
    %98 = vector.extract_strided_slice %90 {offsets = [0, 64], sizes = [8, 64], strides = [1, 1]} : vector<8x128xf32> to vector<8x64xf32>
    %99 = arith.mulf %92, %69 : vector<8x64xf32>
    %100 = arith.mulf %91, %97 : vector<8x64xf32>
    %101 = arith.addf %99, %100 : vector<8x64xf32>
    %102 = math.tanh %101 : vector<8x64xf32>
    %103 = arith.mulf %98, %102 : vector<8x64xf32>
    %104 = arith.addf %72, %103 : vector<8x64xf32>
    %c3_i32 = arith.constant 3 : i32
    %c8_i32_30 = arith.constant 8 : i32
    %105 = arith.muli %c3_i32, %c8_i32_30 : i32
    %106 = tpu.assume_multiple %105, 8 : i32
    %107 = arith.index_cast %106 : i32 to index
    %c0_31 = arith.constant 0 : index
    %108 = vector.load %arg7[%107, %c0_31] : memref<128x256xf32, #tpu.memory_space<vmem>>, vector<8x256xf32>
    %cst_32 = arith.constant dense<0.000000e+00> : vector<8x256xf32>
    %109 = tpu.matmul %103, %7, %cst_32 {dimension_numbers = #tpu.dot_dimension_numbers<[1], [0], [0], [1], [0, 0, 1, 1], [], []>} : vector<8x64xf32>, vector<64x256xf32>, vector<8x256xf32> -> vector<8x256xf32>
    %110 = arith.addf %108, %109 : vector<8x256xf32>
    %111 = vector.extract_strided_slice %110 {offsets = [0, 0], sizes = [8, 128], strides = [1, 1]} : vector<8x256xf32> to vector<8x128xf32>
    %112 = arith.negf %111 : vector<8x128xf32>
    %113 = math.exp %112 : vector<8x128xf32>
    %cst_33 = arith.constant 1.000000e+00 : f32
    %114 = vector.broadcast %cst_33 : f32 to vector<8x128xf32>
    %115 = arith.addf %114, %113 : vector<8x128xf32>
    %116 = arith.divf %114, %115 : vector<8x128xf32>
    %117 = vector.extract_strided_slice %110 {offsets = [0, 128], sizes = [8, 128], strides = [1, 1]} : vector<8x256xf32> to vector<8x128xf32>
    %118 = arith.negf %117 : vector<8x128xf32>
    %119 = math.exp %118 : vector<8x128xf32>
    %cst_34 = arith.constant 1.000000e+00 : f32
    %120 = vector.broadcast %cst_34 : f32 to vector<8x128xf32>
    %121 = arith.addf %120, %119 : vector<8x128xf32>
    %122 = arith.divf %120, %121 : vector<8x128xf32>
    %123 = vector.extract_strided_slice %116 {offsets = [0, 0], sizes = [8, 64], strides = [1, 1]} : vector<8x128xf32> to vector<8x64xf32>
    %124 = vector.extract_strided_slice %116 {offsets = [0, 64], sizes = [8, 64], strides = [1, 1]} : vector<8x128xf32> to vector<8x64xf32>
    %125 = vector.extract_strided_slice %122 {offsets = [0, 0], sizes = [8, 64], strides = [1, 1]} : vector<8x128xf32> to vector<8x64xf32>
    %cst_35 = arith.constant 2.000000e+00 : f32
    %126 = vector.broadcast %cst_35 : f32 to vector<8x64xf32>
    %127 = arith.mulf %126, %125 : vector<8x64xf32>
    %cst_36 = arith.constant 1.000000e+00 : f32
    %128 = vector.broadcast %cst_36 : f32 to vector<8x64xf32>
    %129 = arith.subf %127, %128 : vector<8x64xf32>
    %130 = vector.extract_strided_slice %122 {offsets = [0, 64], sizes = [8, 64], strides = [1, 1]} : vector<8x128xf32> to vector<8x64xf32>
    %131 = arith.mulf %124, %101 : vector<8x64xf32>
    %132 = arith.mulf %123, %129 : vector<8x64xf32>
    %133 = arith.addf %131, %132 : vector<8x64xf32>
    %134 = math.tanh %133 : vector<8x64xf32>
    %135 = arith.mulf %130, %134 : vector<8x64xf32>
    %136 = arith.addf %104, %135 : vector<8x64xf32>
    %c4_i32 = arith.constant 4 : i32
    %c8_i32_37 = arith.constant 8 : i32
    %137 = arith.muli %c4_i32, %c8_i32_37 : i32
    %138 = tpu.assume_multiple %137, 8 : i32
    %139 = arith.index_cast %138 : i32 to index
    %c0_38 = arith.constant 0 : index
    %140 = vector.load %arg7[%139, %c0_38] : memref<128x256xf32, #tpu.memory_space<vmem>>, vector<8x256xf32>
    %cst_39 = arith.constant dense<0.000000e+00> : vector<8x256xf32>
    %141 = tpu.matmul %135, %7, %cst_39 {dimension_numbers = #tpu.dot_dimension_numbers<[1], [0], [0], [1], [0, 0, 1, 1], [], []>} : vector<8x64xf32>, vector<64x256xf32>, vector<8x256xf32> -> vector<8x256xf32>
    %142 = arith.addf %140, %141 : vector<8x256xf32>
    %143 = vector.extract_strided_slice %142 {offsets = [0, 0], sizes = [8, 128], strides = [1, 1]} : vector<8x256xf32> to vector<8x128xf32>
    %144 = arith.negf %143 : vector<8x128xf32>
    %145 = math.exp %144 : vector<8x128xf32>
    %cst_40 = arith.constant 1.000000e+00 : f32
    %146 = vector.broadcast %cst_40 : f32 to vector<8x128xf32>
    %147 = arith.addf %146, %145 : vector<8x128xf32>
    %148 = arith.divf %146, %147 : vector<8x128xf32>
    %149 = vector.extract_strided_slice %142 {offsets = [0, 128], sizes = [8, 128], strides = [1, 1]} : vector<8x256xf32> to vector<8x128xf32>
    %150 = arith.negf %149 : vector<8x128xf32>
    %151 = math.exp %150 : vector<8x128xf32>
    %cst_41 = arith.constant 1.000000e+00 : f32
    %152 = vector.broadcast %cst_41 : f32 to vector<8x128xf32>
    %153 = arith.addf %152, %151 : vector<8x128xf32>
    %154 = arith.divf %152, %153 : vector<8x128xf32>
    %155 = vector.extract_strided_slice %148 {offsets = [0, 0], sizes = [8, 64], strides = [1, 1]} : vector<8x128xf32> to vector<8x64xf32>
    %156 = vector.extract_strided_slice %148 {offsets = [0, 64], sizes = [8, 64], strides = [1, 1]} : vector<8x128xf32> to vector<8x64xf32>
    %157 = vector.extract_strided_slice %154 {offsets = [0, 0], sizes = [8, 64], strides = [1, 1]} : vector<8x128xf32> to vector<8x64xf32>
    %cst_42 = arith.constant 2.000000e+00 : f32
    %158 = vector.broadcast %cst_42 : f32 to vector<8x64xf32>
    %159 = arith.mulf %158, %157 : vector<8x64xf32>
    %cst_43 = arith.constant 1.000000e+00 : f32
    %160 = vector.broadcast %cst_43 : f32 to vector<8x64xf32>
    %161 = arith.subf %159, %160 : vector<8x64xf32>
    %162 = vector.extract_strided_slice %154 {offsets = [0, 64], sizes = [8, 64], strides = [1, 1]} : vector<8x128xf32> to vector<8x64xf32>
    %163 = arith.mulf %156, %133 : vector<8x64xf32>
    %164 = arith.mulf %155, %161 : vector<8x64xf32>
    %165 = arith.addf %163, %164 : vector<8x64xf32>
    %166 = math.tanh %165 : vector<8x64xf32>
    %167 = arith.mulf %162, %166 : vector<8x64xf32>
    %168 = arith.addf %136, %167 : vector<8x64xf32>
    %c5_i32 = arith.constant 5 : i32
    %c8_i32_44 = arith.constant 8 : i32
    %169 = arith.muli %c5_i32, %c8_i32_44 : i32
    %170 = tpu.assume_multiple %169, 8 : i32
    %171 = arith.index_cast %170 : i32 to index
    %c0_45 = arith.constant 0 : index
    %172 = vector.load %arg7[%171, %c0_45] : memref<128x256xf32, #tpu.memory_space<vmem>>, vector<8x256xf32>
    %cst_46 = arith.constant dense<0.000000e+00> : vector<8x256xf32>
    %173 = tpu.matmul %167, %7, %cst_46 {dimension_numbers = #tpu.dot_dimension_numbers<[1], [0], [0], [1], [0, 0, 1, 1], [], []>} : vector<8x64xf32>, vector<64x256xf32>, vector<8x256xf32> -> vector<8x256xf32>
    %174 = arith.addf %172, %173 : vector<8x256xf32>
    %175 = vector.extract_strided_slice %174 {offsets = [0, 0], sizes = [8, 128], strides = [1, 1]} : vector<8x256xf32> to vector<8x128xf32>
    %176 = arith.negf %175 : vector<8x128xf32>
    %177 = math.exp %176 : vector<8x128xf32>
    %cst_47 = arith.constant 1.000000e+00 : f32
    %178 = vector.broadcast %cst_47 : f32 to vector<8x128xf32>
    %179 = arith.addf %178, %177 : vector<8x128xf32>
    %180 = arith.divf %178, %179 : vector<8x128xf32>
    %181 = vector.extract_strided_slice %174 {offsets = [0, 128], sizes = [8, 128], strides = [1, 1]} : vector<8x256xf32> to vector<8x128xf32>
    %182 = arith.negf %181 : vector<8x128xf32>
    %183 = math.exp %182 : vector<8x128xf32>
    %cst_48 = arith.constant 1.000000e+00 : f32
    %184 = vector.broadcast %cst_48 : f32 to vector<8x128xf32>
    %185 = arith.addf %184, %183 : vector<8x128xf32>
    %186 = arith.divf %184, %185 : vector<8x128xf32>
    %187 = vector.extract_strided_slice %180 {offsets = [0, 0], sizes = [8, 64], strides = [1, 1]} : vector<8x128xf32> to vector<8x64xf32>
    %188 = vector.extract_strided_slice %180 {offsets = [0, 64], sizes = [8, 64], strides = [1, 1]} : vector<8x128xf32> to vector<8x64xf32>
    %189 = vector.extract_strided_slice %186 {offsets = [0, 0], sizes = [8, 64], strides = [1, 1]} : vector<8x128xf32> to vector<8x64xf32>
    %cst_49 = arith.constant 2.000000e+00 : f32
    %190 = vector.broadcast %cst_49 : f32 to vector<8x64xf32>
    %191 = arith.mulf %190, %189 : vector<8x64xf32>
    %cst_50 = arith.constant 1.000000e+00 : f32
    %192 = vector.broadcast %cst_50 : f32 to vector<8x64xf32>
    %193 = arith.subf %191, %192 : vector<8x64xf32>
    %194 = vector.extract_strided_slice %186 {offsets = [0, 64], sizes = [8, 64], strides = [1, 1]} : vector<8x128xf32> to vector<8x64xf32>
    %195 = arith.mulf %188, %165 : vector<8x64xf32>
    %196 = arith.mulf %187, %193 : vector<8x64xf32>
    %197 = arith.addf %195, %196 : vector<8x64xf32>
    %198 = math.tanh %197 : vector<8x64xf32>
    %199 = arith.mulf %194, %198 : vector<8x64xf32>
    %200 = arith.addf %168, %199 : vector<8x64xf32>
    %c6_i32 = arith.constant 6 : i32
    %c8_i32_51 = arith.constant 8 : i32
    %201 = arith.muli %c6_i32, %c8_i32_51 : i32
    %202 = tpu.assume_multiple %201, 8 : i32
    %203 = arith.index_cast %202 : i32 to index
    %c0_52 = arith.constant 0 : index
    %204 = vector.load %arg7[%203, %c0_52] : memref<128x256xf32, #tpu.memory_space<vmem>>, vector<8x256xf32>
    %cst_53 = arith.constant dense<0.000000e+00> : vector<8x256xf32>
    %205 = tpu.matmul %199, %7, %cst_53 {dimension_numbers = #tpu.dot_dimension_numbers<[1], [0], [0], [1], [0, 0, 1, 1], [], []>} : vector<8x64xf32>, vector<64x256xf32>, vector<8x256xf32> -> vector<8x256xf32>
    %206 = arith.addf %204, %205 : vector<8x256xf32>
    %207 = vector.extract_strided_slice %206 {offsets = [0, 0], sizes = [8, 128], strides = [1, 1]} : vector<8x256xf32> to vector<8x128xf32>
    %208 = arith.negf %207 : vector<8x128xf32>
    %209 = math.exp %208 : vector<8x128xf32>
    %cst_54 = arith.constant 1.000000e+00 : f32
    %210 = vector.broadcast %cst_54 : f32 to vector<8x128xf32>
    %211 = arith.addf %210, %209 : vector<8x128xf32>
    %212 = arith.divf %210, %211 : vector<8x128xf32>
    %213 = vector.extract_strided_slice %206 {offsets = [0, 128], sizes = [8, 128], strides = [1, 1]} : vector<8x256xf32> to vector<8x128xf32>
    %214 = arith.negf %213 : vector<8x128xf32>
    %215 = math.exp %214 : vector<8x128xf32>
    %cst_55 = arith.constant 1.000000e+00 : f32
    %216 = vector.broadcast %cst_55 : f32 to vector<8x128xf32>
    %217 = arith.addf %216, %215 : vector<8x128xf32>
    %218 = arith.divf %216, %217 : vector<8x128xf32>
    %219 = vector.extract_strided_slice %212 {offsets = [0, 0], sizes = [8, 64], strides = [1, 1]} : vector<8x128xf32> to vector<8x64xf32>
    %220 = vector.extract_strided_slice %212 {offsets = [0, 64], sizes = [8, 64], strides = [1, 1]} : vector<8x128xf32> to vector<8x64xf32>
    %221 = vector.extract_strided_slice %218 {offsets = [0, 0], sizes = [8, 64], strides = [1, 1]} : vector<8x128xf32> to vector<8x64xf32>
    %cst_56 = arith.constant 2.000000e+00 : f32
    %222 = vector.broadcast %cst_56 : f32 to vector<8x64xf32>
    %223 = arith.mulf %222, %221 : vector<8x64xf32>
    %cst_57 = arith.constant 1.000000e+00 : f32
    %224 = vector.broadcast %cst_57 : f32 to vector<8x64xf32>
    %225 = arith.subf %223, %224 : vector<8x64xf32>
    %226 = vector.extract_strided_slice %218 {offsets = [0, 64], sizes = [8, 64], strides = [1, 1]} : vector<8x128xf32> to vector<8x64xf32>
    %227 = arith.mulf %220, %197 : vector<8x64xf32>
    %228 = arith.mulf %219, %225 : vector<8x64xf32>
    %229 = arith.addf %227, %228 : vector<8x64xf32>
    %230 = math.tanh %229 : vector<8x64xf32>
    %231 = arith.mulf %226, %230 : vector<8x64xf32>
    %232 = arith.addf %200, %231 : vector<8x64xf32>
    %c7_i32 = arith.constant 7 : i32
    %c8_i32_58 = arith.constant 8 : i32
    %233 = arith.muli %c7_i32, %c8_i32_58 : i32
    %234 = tpu.assume_multiple %233, 8 : i32
    %235 = arith.index_cast %234 : i32 to index
    %c0_59 = arith.constant 0 : index
    %236 = vector.load %arg7[%235, %c0_59] : memref<128x256xf32, #tpu.memory_space<vmem>>, vector<8x256xf32>
    %cst_60 = arith.constant dense<0.000000e+00> : vector<8x256xf32>
    %237 = tpu.matmul %231, %7, %cst_60 {dimension_numbers = #tpu.dot_dimension_numbers<[1], [0], [0], [1], [0, 0, 1, 1], [], []>} : vector<8x64xf32>, vector<64x256xf32>, vector<8x256xf32> -> vector<8x256xf32>
    %238 = arith.addf %236, %237 : vector<8x256xf32>
    %239 = vector.extract_strided_slice %238 {offsets = [0, 0], sizes = [8, 128], strides = [1, 1]} : vector<8x256xf32> to vector<8x128xf32>
    %240 = arith.negf %239 : vector<8x128xf32>
    %241 = math.exp %240 : vector<8x128xf32>
    %cst_61 = arith.constant 1.000000e+00 : f32
    %242 = vector.broadcast %cst_61 : f32 to vector<8x128xf32>
    %243 = arith.addf %242, %241 : vector<8x128xf32>
    %244 = arith.divf %242, %243 : vector<8x128xf32>
    %245 = vector.extract_strided_slice %238 {offsets = [0, 128], sizes = [8, 128], strides = [1, 1]} : vector<8x256xf32> to vector<8x128xf32>
    %246 = arith.negf %245 : vector<8x128xf32>
    %247 = math.exp %246 : vector<8x128xf32>
    %cst_62 = arith.constant 1.000000e+00 : f32
    %248 = vector.broadcast %cst_62 : f32 to vector<8x128xf32>
    %249 = arith.addf %248, %247 : vector<8x128xf32>
    %250 = arith.divf %248, %249 : vector<8x128xf32>
    %251 = vector.extract_strided_slice %244 {offsets = [0, 0], sizes = [8, 64], strides = [1, 1]} : vector<8x128xf32> to vector<8x64xf32>
    %252 = vector.extract_strided_slice %244 {offsets = [0, 64], sizes = [8, 64], strides = [1, 1]} : vector<8x128xf32> to vector<8x64xf32>
    %253 = vector.extract_strided_slice %250 {offsets = [0, 0], sizes = [8, 64], strides = [1, 1]} : vector<8x128xf32> to vector<8x64xf32>
    %cst_63 = arith.constant 2.000000e+00 : f32
    %254 = vector.broadcast %cst_63 : f32 to vector<8x64xf32>
    %255 = arith.mulf %254, %253 : vector<8x64xf32>
    %cst_64 = arith.constant 1.000000e+00 : f32
    %256 = vector.broadcast %cst_64 : f32 to vector<8x64xf32>
    %257 = arith.subf %255, %256 : vector<8x64xf32>
    %258 = vector.extract_strided_slice %250 {offsets = [0, 64], sizes = [8, 64], strides = [1, 1]} : vector<8x128xf32> to vector<8x64xf32>
    %259 = arith.mulf %252, %229 : vector<8x64xf32>
    %260 = arith.mulf %251, %257 : vector<8x64xf32>
    %261 = arith.addf %259, %260 : vector<8x64xf32>
    %262 = math.tanh %261 : vector<8x64xf32>
    %263 = arith.mulf %258, %262 : vector<8x64xf32>
    %264 = arith.addf %232, %263 : vector<8x64xf32>
    %c8_i32_65 = arith.constant 8 : i32
    %c8_i32_66 = arith.constant 8 : i32
    %265 = arith.muli %c8_i32_65, %c8_i32_66 : i32
    %266 = tpu.assume_multiple %265, 8 : i32
    %267 = arith.index_cast %266 : i32 to index
    %c0_67 = arith.constant 0 : index
    %268 = vector.load %arg7[%267, %c0_67] : memref<128x256xf32, #tpu.memory_space<vmem>>, vector<8x256xf32>
    %cst_68 = arith.constant dense<0.000000e+00> : vector<8x256xf32>
    %269 = tpu.matmul %263, %7, %cst_68 {dimension_numbers = #tpu.dot_dimension_numbers<[1], [0], [0], [1], [0, 0, 1, 1], [], []>} : vector<8x64xf32>, vector<64x256xf32>, vector<8x256xf32> -> vector<8x256xf32>
    %270 = arith.addf %268, %269 : vector<8x256xf32>
    %271 = vector.extract_strided_slice %270 {offsets = [0, 0], sizes = [8, 128], strides = [1, 1]} : vector<8x256xf32> to vector<8x128xf32>
    %272 = arith.negf %271 : vector<8x128xf32>
    %273 = math.exp %272 : vector<8x128xf32>
    %cst_69 = arith.constant 1.000000e+00 : f32
    %274 = vector.broadcast %cst_69 : f32 to vector<8x128xf32>
    %275 = arith.addf %274, %273 : vector<8x128xf32>
    %276 = arith.divf %274, %275 : vector<8x128xf32>
    %277 = vector.extract_strided_slice %270 {offsets = [0, 128], sizes = [8, 128], strides = [1, 1]} : vector<8x256xf32> to vector<8x128xf32>
    %278 = arith.negf %277 : vector<8x128xf32>
    %279 = math.exp %278 : vector<8x128xf32>
    %cst_70 = arith.constant 1.000000e+00 : f32
    %280 = vector.broadcast %cst_70 : f32 to vector<8x128xf32>
    %281 = arith.addf %280, %279 : vector<8x128xf32>
    %282 = arith.divf %280, %281 : vector<8x128xf32>
    %283 = vector.extract_strided_slice %276 {offsets = [0, 0], sizes = [8, 64], strides = [1, 1]} : vector<8x128xf32> to vector<8x64xf32>
    %284 = vector.extract_strided_slice %276 {offsets = [0, 64], sizes = [8, 64], strides = [1, 1]} : vector<8x128xf32> to vector<8x64xf32>
    %285 = vector.extract_strided_slice %282 {offsets = [0, 0], sizes = [8, 64], strides = [1, 1]} : vector<8x128xf32> to vector<8x64xf32>
    %cst_71 = arith.constant 2.000000e+00 : f32
    %286 = vector.broadcast %cst_71 : f32 to vector<8x64xf32>
    %287 = arith.mulf %286, %285 : vector<8x64xf32>
    %cst_72 = arith.constant 1.000000e+00 : f32
    %288 = vector.broadcast %cst_72 : f32 to vector<8x64xf32>
    %289 = arith.subf %287, %288 : vector<8x64xf32>
    %290 = vector.extract_strided_slice %282 {offsets = [0, 64], sizes = [8, 64], strides = [1, 1]} : vector<8x128xf32> to vector<8x64xf32>
    %291 = arith.mulf %284, %261 : vector<8x64xf32>
    %292 = arith.mulf %283, %289 : vector<8x64xf32>
    %293 = arith.addf %291, %292 : vector<8x64xf32>
    %294 = math.tanh %293 : vector<8x64xf32>
    %295 = arith.mulf %290, %294 : vector<8x64xf32>
    %296 = arith.addf %264, %295 : vector<8x64xf32>
    %c9_i32 = arith.constant 9 : i32
    %c8_i32_73 = arith.constant 8 : i32
    %297 = arith.muli %c9_i32, %c8_i32_73 : i32
    %298 = tpu.assume_multiple %297, 8 : i32
    %299 = arith.index_cast %298 : i32 to index
    %c0_74 = arith.constant 0 : index
    %300 = vector.load %arg7[%299, %c0_74] : memref<128x256xf32, #tpu.memory_space<vmem>>, vector<8x256xf32>
    %cst_75 = arith.constant dense<0.000000e+00> : vector<8x256xf32>
    %301 = tpu.matmul %295, %7, %cst_75 {dimension_numbers = #tpu.dot_dimension_numbers<[1], [0], [0], [1], [0, 0, 1, 1], [], []>} : vector<8x64xf32>, vector<64x256xf32>, vector<8x256xf32> -> vector<8x256xf32>
    %302 = arith.addf %300, %301 : vector<8x256xf32>
    %303 = vector.extract_strided_slice %302 {offsets = [0, 0], sizes = [8, 128], strides = [1, 1]} : vector<8x256xf32> to vector<8x128xf32>
    %304 = arith.negf %303 : vector<8x128xf32>
    %305 = math.exp %304 : vector<8x128xf32>
    %cst_76 = arith.constant 1.000000e+00 : f32
    %306 = vector.broadcast %cst_76 : f32 to vector<8x128xf32>
    %307 = arith.addf %306, %305 : vector<8x128xf32>
    %308 = arith.divf %306, %307 : vector<8x128xf32>
    %309 = vector.extract_strided_slice %302 {offsets = [0, 128], sizes = [8, 128], strides = [1, 1]} : vector<8x256xf32> to vector<8x128xf32>
    %310 = arith.negf %309 : vector<8x128xf32>
    %311 = math.exp %310 : vector<8x128xf32>
    %cst_77 = arith.constant 1.000000e+00 : f32
    %312 = vector.broadcast %cst_77 : f32 to vector<8x128xf32>
    %313 = arith.addf %312, %311 : vector<8x128xf32>
    %314 = arith.divf %312, %313 : vector<8x128xf32>
    %315 = vector.extract_strided_slice %308 {offsets = [0, 0], sizes = [8, 64], strides = [1, 1]} : vector<8x128xf32> to vector<8x64xf32>
    %316 = vector.extract_strided_slice %308 {offsets = [0, 64], sizes = [8, 64], strides = [1, 1]} : vector<8x128xf32> to vector<8x64xf32>
    %317 = vector.extract_strided_slice %314 {offsets = [0, 0], sizes = [8, 64], strides = [1, 1]} : vector<8x128xf32> to vector<8x64xf32>
    %cst_78 = arith.constant 2.000000e+00 : f32
    %318 = vector.broadcast %cst_78 : f32 to vector<8x64xf32>
    %319 = arith.mulf %318, %317 : vector<8x64xf32>
    %cst_79 = arith.constant 1.000000e+00 : f32
    %320 = vector.broadcast %cst_79 : f32 to vector<8x64xf32>
    %321 = arith.subf %319, %320 : vector<8x64xf32>
    %322 = vector.extract_strided_slice %314 {offsets = [0, 64], sizes = [8, 64], strides = [1, 1]} : vector<8x128xf32> to vector<8x64xf32>
    %323 = arith.mulf %316, %293 : vector<8x64xf32>
    %324 = arith.mulf %315, %321 : vector<8x64xf32>
    %325 = arith.addf %323, %324 : vector<8x64xf32>
    %326 = math.tanh %325 : vector<8x64xf32>
    %327 = arith.mulf %322, %326 : vector<8x64xf32>
    %328 = arith.addf %296, %327 : vector<8x64xf32>
    %c10_i32 = arith.constant 10 : i32
    %c8_i32_80 = arith.constant 8 : i32
    %329 = arith.muli %c10_i32, %c8_i32_80 : i32
    %330 = tpu.assume_multiple %329, 8 : i32
    %331 = arith.index_cast %330 : i32 to index
    %c0_81 = arith.constant 0 : index
    %332 = vector.load %arg7[%331, %c0_81] : memref<128x256xf32, #tpu.memory_space<vmem>>, vector<8x256xf32>
    %cst_82 = arith.constant dense<0.000000e+00> : vector<8x256xf32>
    %333 = tpu.matmul %327, %7, %cst_82 {dimension_numbers = #tpu.dot_dimension_numbers<[1], [0], [0], [1], [0, 0, 1, 1], [], []>} : vector<8x64xf32>, vector<64x256xf32>, vector<8x256xf32> -> vector<8x256xf32>
    %334 = arith.addf %332, %333 : vector<8x256xf32>
    %335 = vector.extract_strided_slice %334 {offsets = [0, 0], sizes = [8, 128], strides = [1, 1]} : vector<8x256xf32> to vector<8x128xf32>
    %336 = arith.negf %335 : vector<8x128xf32>
    %337 = math.exp %336 : vector<8x128xf32>
    %cst_83 = arith.constant 1.000000e+00 : f32
    %338 = vector.broadcast %cst_83 : f32 to vector<8x128xf32>
    %339 = arith.addf %338, %337 : vector<8x128xf32>
    %340 = arith.divf %338, %339 : vector<8x128xf32>
    %341 = vector.extract_strided_slice %334 {offsets = [0, 128], sizes = [8, 128], strides = [1, 1]} : vector<8x256xf32> to vector<8x128xf32>
    %342 = arith.negf %341 : vector<8x128xf32>
    %343 = math.exp %342 : vector<8x128xf32>
    %cst_84 = arith.constant 1.000000e+00 : f32
    %344 = vector.broadcast %cst_84 : f32 to vector<8x128xf32>
    %345 = arith.addf %344, %343 : vector<8x128xf32>
    %346 = arith.divf %344, %345 : vector<8x128xf32>
    %347 = vector.extract_strided_slice %340 {offsets = [0, 0], sizes = [8, 64], strides = [1, 1]} : vector<8x128xf32> to vector<8x64xf32>
    %348 = vector.extract_strided_slice %340 {offsets = [0, 64], sizes = [8, 64], strides = [1, 1]} : vector<8x128xf32> to vector<8x64xf32>
    %349 = vector.extract_strided_slice %346 {offsets = [0, 0], sizes = [8, 64], strides = [1, 1]} : vector<8x128xf32> to vector<8x64xf32>
    %cst_85 = arith.constant 2.000000e+00 : f32
    %350 = vector.broadcast %cst_85 : f32 to vector<8x64xf32>
    %351 = arith.mulf %350, %349 : vector<8x64xf32>
    %cst_86 = arith.constant 1.000000e+00 : f32
    %352 = vector.broadcast %cst_86 : f32 to vector<8x64xf32>
    %353 = arith.subf %351, %352 : vector<8x64xf32>
    %354 = vector.extract_strided_slice %346 {offsets = [0, 64], sizes = [8, 64], strides = [1, 1]} : vector<8x128xf32> to vector<8x64xf32>
    %355 = arith.mulf %348, %325 : vector<8x64xf32>
    %356 = arith.mulf %347, %353 : vector<8x64xf32>
    %357 = arith.addf %355, %356 : vector<8x64xf32>
    %358 = math.tanh %357 : vector<8x64xf32>
    %359 = arith.mulf %354, %358 : vector<8x64xf32>
    %360 = arith.addf %328, %359 : vector<8x64xf32>
    %c11_i32 = arith.constant 11 : i32
    %c8_i32_87 = arith.constant 8 : i32
    %361 = arith.muli %c11_i32, %c8_i32_87 : i32
    %362 = tpu.assume_multiple %361, 8 : i32
    %363 = arith.index_cast %362 : i32 to index
    %c0_88 = arith.constant 0 : index
    %364 = vector.load %arg7[%363, %c0_88] : memref<128x256xf32, #tpu.memory_space<vmem>>, vector<8x256xf32>
    %cst_89 = arith.constant dense<0.000000e+00> : vector<8x256xf32>
    %365 = tpu.matmul %359, %7, %cst_89 {dimension_numbers = #tpu.dot_dimension_numbers<[1], [0], [0], [1], [0, 0, 1, 1], [], []>} : vector<8x64xf32>, vector<64x256xf32>, vector<8x256xf32> -> vector<8x256xf32>
    %366 = arith.addf %364, %365 : vector<8x256xf32>
    %367 = vector.extract_strided_slice %366 {offsets = [0, 0], sizes = [8, 128], strides = [1, 1]} : vector<8x256xf32> to vector<8x128xf32>
    %368 = arith.negf %367 : vector<8x128xf32>
    %369 = math.exp %368 : vector<8x128xf32>
    %cst_90 = arith.constant 1.000000e+00 : f32
    %370 = vector.broadcast %cst_90 : f32 to vector<8x128xf32>
    %371 = arith.addf %370, %369 : vector<8x128xf32>
    %372 = arith.divf %370, %371 : vector<8x128xf32>
    %373 = vector.extract_strided_slice %366 {offsets = [0, 128], sizes = [8, 128], strides = [1, 1]} : vector<8x256xf32> to vector<8x128xf32>
    %374 = arith.negf %373 : vector<8x128xf32>
    %375 = math.exp %374 : vector<8x128xf32>
    %cst_91 = arith.constant 1.000000e+00 : f32
    %376 = vector.broadcast %cst_91 : f32 to vector<8x128xf32>
    %377 = arith.addf %376, %375 : vector<8x128xf32>
    %378 = arith.divf %376, %377 : vector<8x128xf32>
    %379 = vector.extract_strided_slice %372 {offsets = [0, 0], sizes = [8, 64], strides = [1, 1]} : vector<8x128xf32> to vector<8x64xf32>
    %380 = vector.extract_strided_slice %372 {offsets = [0, 64], sizes = [8, 64], strides = [1, 1]} : vector<8x128xf32> to vector<8x64xf32>
    %381 = vector.extract_strided_slice %378 {offsets = [0, 0], sizes = [8, 64], strides = [1, 1]} : vector<8x128xf32> to vector<8x64xf32>
    %cst_92 = arith.constant 2.000000e+00 : f32
    %382 = vector.broadcast %cst_92 : f32 to vector<8x64xf32>
    %383 = arith.mulf %382, %381 : vector<8x64xf32>
    %cst_93 = arith.constant 1.000000e+00 : f32
    %384 = vector.broadcast %cst_93 : f32 to vector<8x64xf32>
    %385 = arith.subf %383, %384 : vector<8x64xf32>
    %386 = vector.extract_strided_slice %378 {offsets = [0, 64], sizes = [8, 64], strides = [1, 1]} : vector<8x128xf32> to vector<8x64xf32>
    %387 = arith.mulf %380, %357 : vector<8x64xf32>
    %388 = arith.mulf %379, %385 : vector<8x64xf32>
    %389 = arith.addf %387, %388 : vector<8x64xf32>
    %390 = math.tanh %389 : vector<8x64xf32>
    %391 = arith.mulf %386, %390 : vector<8x64xf32>
    %392 = arith.addf %360, %391 : vector<8x64xf32>
    %c12_i32 = arith.constant 12 : i32
    %c8_i32_94 = arith.constant 8 : i32
    %393 = arith.muli %c12_i32, %c8_i32_94 : i32
    %394 = tpu.assume_multiple %393, 8 : i32
    %395 = arith.index_cast %394 : i32 to index
    %c0_95 = arith.constant 0 : index
    %396 = vector.load %arg7[%395, %c0_95] : memref<128x256xf32, #tpu.memory_space<vmem>>, vector<8x256xf32>
    %cst_96 = arith.constant dense<0.000000e+00> : vector<8x256xf32>
    %397 = tpu.matmul %391, %7, %cst_96 {dimension_numbers = #tpu.dot_dimension_numbers<[1], [0], [0], [1], [0, 0, 1, 1], [], []>} : vector<8x64xf32>, vector<64x256xf32>, vector<8x256xf32> -> vector<8x256xf32>
    %398 = arith.addf %396, %397 : vector<8x256xf32>
    %399 = vector.extract_strided_slice %398 {offsets = [0, 0], sizes = [8, 128], strides = [1, 1]} : vector<8x256xf32> to vector<8x128xf32>
    %400 = arith.negf %399 : vector<8x128xf32>
    %401 = math.exp %400 : vector<8x128xf32>
    %cst_97 = arith.constant 1.000000e+00 : f32
    %402 = vector.broadcast %cst_97 : f32 to vector<8x128xf32>
    %403 = arith.addf %402, %401 : vector<8x128xf32>
    %404 = arith.divf %402, %403 : vector<8x128xf32>
    %405 = vector.extract_strided_slice %398 {offsets = [0, 128], sizes = [8, 128], strides = [1, 1]} : vector<8x256xf32> to vector<8x128xf32>
    %406 = arith.negf %405 : vector<8x128xf32>
    %407 = math.exp %406 : vector<8x128xf32>
    %cst_98 = arith.constant 1.000000e+00 : f32
    %408 = vector.broadcast %cst_98 : f32 to vector<8x128xf32>
    %409 = arith.addf %408, %407 : vector<8x128xf32>
    %410 = arith.divf %408, %409 : vector<8x128xf32>
    %411 = vector.extract_strided_slice %404 {offsets = [0, 0], sizes = [8, 64], strides = [1, 1]} : vector<8x128xf32> to vector<8x64xf32>
    %412 = vector.extract_strided_slice %404 {offsets = [0, 64], sizes = [8, 64], strides = [1, 1]} : vector<8x128xf32> to vector<8x64xf32>
    %413 = vector.extract_strided_slice %410 {offsets = [0, 0], sizes = [8, 64], strides = [1, 1]} : vector<8x128xf32> to vector<8x64xf32>
    %cst_99 = arith.constant 2.000000e+00 : f32
    %414 = vector.broadcast %cst_99 : f32 to vector<8x64xf32>
    %415 = arith.mulf %414, %413 : vector<8x64xf32>
    %cst_100 = arith.constant 1.000000e+00 : f32
    %416 = vector.broadcast %cst_100 : f32 to vector<8x64xf32>
    %417 = arith.subf %415, %416 : vector<8x64xf32>
    %418 = vector.extract_strided_slice %410 {offsets = [0, 64], sizes = [8, 64], strides = [1, 1]} : vector<8x128xf32> to vector<8x64xf32>
    %419 = arith.mulf %412, %389 : vector<8x64xf32>
    %420 = arith.mulf %411, %417 : vector<8x64xf32>
    %421 = arith.addf %419, %420 : vector<8x64xf32>
    %422 = math.tanh %421 : vector<8x64xf32>
    %423 = arith.mulf %418, %422 : vector<8x64xf32>
    %424 = arith.addf %392, %423 : vector<8x64xf32>
    %c13_i32 = arith.constant 13 : i32
    %c8_i32_101 = arith.constant 8 : i32
    %425 = arith.muli %c13_i32, %c8_i32_101 : i32
    %426 = tpu.assume_multiple %425, 8 : i32
    %427 = arith.index_cast %426 : i32 to index
    %c0_102 = arith.constant 0 : index
    %428 = vector.load %arg7[%427, %c0_102] : memref<128x256xf32, #tpu.memory_space<vmem>>, vector<8x256xf32>
    %cst_103 = arith.constant dense<0.000000e+00> : vector<8x256xf32>
    %429 = tpu.matmul %423, %7, %cst_103 {dimension_numbers = #tpu.dot_dimension_numbers<[1], [0], [0], [1], [0, 0, 1, 1], [], []>} : vector<8x64xf32>, vector<64x256xf32>, vector<8x256xf32> -> vector<8x256xf32>
    %430 = arith.addf %428, %429 : vector<8x256xf32>
    %431 = vector.extract_strided_slice %430 {offsets = [0, 0], sizes = [8, 128], strides = [1, 1]} : vector<8x256xf32> to vector<8x128xf32>
    %432 = arith.negf %431 : vector<8x128xf32>
    %433 = math.exp %432 : vector<8x128xf32>
    %cst_104 = arith.constant 1.000000e+00 : f32
    %434 = vector.broadcast %cst_104 : f32 to vector<8x128xf32>
    %435 = arith.addf %434, %433 : vector<8x128xf32>
    %436 = arith.divf %434, %435 : vector<8x128xf32>
    %437 = vector.extract_strided_slice %430 {offsets = [0, 128], sizes = [8, 128], strides = [1, 1]} : vector<8x256xf32> to vector<8x128xf32>
    %438 = arith.negf %437 : vector<8x128xf32>
    %439 = math.exp %438 : vector<8x128xf32>
    %cst_105 = arith.constant 1.000000e+00 : f32
    %440 = vector.broadcast %cst_105 : f32 to vector<8x128xf32>
    %441 = arith.addf %440, %439 : vector<8x128xf32>
    %442 = arith.divf %440, %441 : vector<8x128xf32>
    %443 = vector.extract_strided_slice %436 {offsets = [0, 0], sizes = [8, 64], strides = [1, 1]} : vector<8x128xf32> to vector<8x64xf32>
    %444 = vector.extract_strided_slice %436 {offsets = [0, 64], sizes = [8, 64], strides = [1, 1]} : vector<8x128xf32> to vector<8x64xf32>
    %445 = vector.extract_strided_slice %442 {offsets = [0, 0], sizes = [8, 64], strides = [1, 1]} : vector<8x128xf32> to vector<8x64xf32>
    %cst_106 = arith.constant 2.000000e+00 : f32
    %446 = vector.broadcast %cst_106 : f32 to vector<8x64xf32>
    %447 = arith.mulf %446, %445 : vector<8x64xf32>
    %cst_107 = arith.constant 1.000000e+00 : f32
    %448 = vector.broadcast %cst_107 : f32 to vector<8x64xf32>
    %449 = arith.subf %447, %448 : vector<8x64xf32>
    %450 = vector.extract_strided_slice %442 {offsets = [0, 64], sizes = [8, 64], strides = [1, 1]} : vector<8x128xf32> to vector<8x64xf32>
    %451 = arith.mulf %444, %421 : vector<8x64xf32>
    %452 = arith.mulf %443, %449 : vector<8x64xf32>
    %453 = arith.addf %451, %452 : vector<8x64xf32>
    %454 = math.tanh %453 : vector<8x64xf32>
    %455 = arith.mulf %450, %454 : vector<8x64xf32>
    %456 = arith.addf %424, %455 : vector<8x64xf32>
    %c14_i32 = arith.constant 14 : i32
    %c8_i32_108 = arith.constant 8 : i32
    %457 = arith.muli %c14_i32, %c8_i32_108 : i32
    %458 = tpu.assume_multiple %457, 8 : i32
    %459 = arith.index_cast %458 : i32 to index
    %c0_109 = arith.constant 0 : index
    %460 = vector.load %arg7[%459, %c0_109] : memref<128x256xf32, #tpu.memory_space<vmem>>, vector<8x256xf32>
    %cst_110 = arith.constant dense<0.000000e+00> : vector<8x256xf32>
    %461 = tpu.matmul %455, %7, %cst_110 {dimension_numbers = #tpu.dot_dimension_numbers<[1], [0], [0], [1], [0, 0, 1, 1], [], []>} : vector<8x64xf32>, vector<64x256xf32>, vector<8x256xf32> -> vector<8x256xf32>
    %462 = arith.addf %460, %461 : vector<8x256xf32>
    %463 = vector.extract_strided_slice %462 {offsets = [0, 0], sizes = [8, 128], strides = [1, 1]} : vector<8x256xf32> to vector<8x128xf32>
    %464 = arith.negf %463 : vector<8x128xf32>
    %465 = math.exp %464 : vector<8x128xf32>
    %cst_111 = arith.constant 1.000000e+00 : f32
    %466 = vector.broadcast %cst_111 : f32 to vector<8x128xf32>
    %467 = arith.addf %466, %465 : vector<8x128xf32>
    %468 = arith.divf %466, %467 : vector<8x128xf32>
    %469 = vector.extract_strided_slice %462 {offsets = [0, 128], sizes = [8, 128], strides = [1, 1]} : vector<8x256xf32> to vector<8x128xf32>
    %470 = arith.negf %469 : vector<8x128xf32>
    %471 = math.exp %470 : vector<8x128xf32>
    %cst_112 = arith.constant 1.000000e+00 : f32
    %472 = vector.broadcast %cst_112 : f32 to vector<8x128xf32>
    %473 = arith.addf %472, %471 : vector<8x128xf32>
    %474 = arith.divf %472, %473 : vector<8x128xf32>
    %475 = vector.extract_strided_slice %468 {offsets = [0, 0], sizes = [8, 64], strides = [1, 1]} : vector<8x128xf32> to vector<8x64xf32>
    %476 = vector.extract_strided_slice %468 {offsets = [0, 64], sizes = [8, 64], strides = [1, 1]} : vector<8x128xf32> to vector<8x64xf32>
    %477 = vector.extract_strided_slice %474 {offsets = [0, 0], sizes = [8, 64], strides = [1, 1]} : vector<8x128xf32> to vector<8x64xf32>
    %cst_113 = arith.constant 2.000000e+00 : f32
    %478 = vector.broadcast %cst_113 : f32 to vector<8x64xf32>
    %479 = arith.mulf %478, %477 : vector<8x64xf32>
    %cst_114 = arith.constant 1.000000e+00 : f32
    %480 = vector.broadcast %cst_114 : f32 to vector<8x64xf32>
    %481 = arith.subf %479, %480 : vector<8x64xf32>
    %482 = vector.extract_strided_slice %474 {offsets = [0, 64], sizes = [8, 64], strides = [1, 1]} : vector<8x128xf32> to vector<8x64xf32>
    %483 = arith.mulf %476, %453 : vector<8x64xf32>
    %484 = arith.mulf %475, %481 : vector<8x64xf32>
    %485 = arith.addf %483, %484 : vector<8x64xf32>
    %486 = math.tanh %485 : vector<8x64xf32>
    %487 = arith.mulf %482, %486 : vector<8x64xf32>
    %488 = arith.addf %456, %487 : vector<8x64xf32>
    %c15_i32 = arith.constant 15 : i32
    %c8_i32_115 = arith.constant 8 : i32
    %489 = arith.muli %c15_i32, %c8_i32_115 : i32
    %490 = tpu.assume_multiple %489, 8 : i32
    %491 = arith.index_cast %490 : i32 to index
    %c0_116 = arith.constant 0 : index
    %492 = vector.load %arg7[%491, %c0_116] : memref<128x256xf32, #tpu.memory_space<vmem>>, vector<8x256xf32>
    %cst_117 = arith.constant dense<0.000000e+00> : vector<8x256xf32>
    %493 = tpu.matmul %487, %7, %cst_117 {dimension_numbers = #tpu.dot_dimension_numbers<[1], [0], [0], [1], [0, 0, 1, 1], [], []>} : vector<8x64xf32>, vector<64x256xf32>, vector<8x256xf32> -> vector<8x256xf32>
    %494 = arith.addf %492, %493 : vector<8x256xf32>
    %495 = vector.extract_strided_slice %494 {offsets = [0, 0], sizes = [8, 128], strides = [1, 1]} : vector<8x256xf32> to vector<8x128xf32>
    %496 = arith.negf %495 : vector<8x128xf32>
    %497 = math.exp %496 : vector<8x128xf32>
    %cst_118 = arith.constant 1.000000e+00 : f32
    %498 = vector.broadcast %cst_118 : f32 to vector<8x128xf32>
    %499 = arith.addf %498, %497 : vector<8x128xf32>
    %500 = arith.divf %498, %499 : vector<8x128xf32>
    %501 = vector.extract_strided_slice %494 {offsets = [0, 128], sizes = [8, 128], strides = [1, 1]} : vector<8x256xf32> to vector<8x128xf32>
    %502 = arith.negf %501 : vector<8x128xf32>
    %503 = math.exp %502 : vector<8x128xf32>
    %cst_119 = arith.constant 1.000000e+00 : f32
    %504 = vector.broadcast %cst_119 : f32 to vector<8x128xf32>
    %505 = arith.addf %504, %503 : vector<8x128xf32>
    %506 = arith.divf %504, %505 : vector<8x128xf32>
    %507 = vector.extract_strided_slice %500 {offsets = [0, 0], sizes = [8, 64], strides = [1, 1]} : vector<8x128xf32> to vector<8x64xf32>
    %508 = vector.extract_strided_slice %500 {offsets = [0, 64], sizes = [8, 64], strides = [1, 1]} : vector<8x128xf32> to vector<8x64xf32>
    %509 = vector.extract_strided_slice %506 {offsets = [0, 0], sizes = [8, 64], strides = [1, 1]} : vector<8x128xf32> to vector<8x64xf32>
    %cst_120 = arith.constant 2.000000e+00 : f32
    %510 = vector.broadcast %cst_120 : f32 to vector<8x64xf32>
    %511 = arith.mulf %510, %509 : vector<8x64xf32>
    %cst_121 = arith.constant 1.000000e+00 : f32
    %512 = vector.broadcast %cst_121 : f32 to vector<8x64xf32>
    %513 = arith.subf %511, %512 : vector<8x64xf32>
    %514 = vector.extract_strided_slice %506 {offsets = [0, 64], sizes = [8, 64], strides = [1, 1]} : vector<8x128xf32> to vector<8x64xf32>
    %515 = arith.mulf %508, %485 : vector<8x64xf32>
    %516 = arith.mulf %507, %513 : vector<8x64xf32>
    %517 = arith.addf %515, %516 : vector<8x64xf32>
    %518 = math.tanh %517 : vector<8x64xf32>
    %519 = arith.mulf %514, %518 : vector<8x64xf32>
    %520 = arith.addf %488, %519 : vector<8x64xf32>
    %c16_i32 = arith.constant 16 : i32
    %cst_122 = arith.constant 6.250000e-02 : f32
    %521 = vector.broadcast %cst_122 : f32 to vector<8x64xf32>
    %522 = arith.mulf %520, %521 : vector<8x64xf32>
    %c0_123 = arith.constant 0 : index
    %c0_124 = arith.constant 0 : index
    %523 = vector.load %arg4[%c0_123, %c0_124] : memref<64x128xf32, #tpu.memory_space<vmem>>, vector<64x128xf32>
    %cst_125 = arith.constant dense<0.000000e+00> : vector<8x128xf32>
    %524 = tpu.matmul %522, %523, %cst_125 {dimension_numbers = #tpu.dot_dimension_numbers<[1], [0], [0], [1], [0, 0, 1, 1], [], []>} : vector<8x64xf32>, vector<64x128xf32>, vector<8x128xf32> -> vector<8x128xf32>
    %c0_126 = arith.constant 0 : index
    %c0_127 = arith.constant 0 : index
    %525 = vector.load %arg5[%c0_126, %c0_127] : memref<1x128xf32, #tpu.memory_space<vmem>>, vector<1x128xf32>
    %526 = vector.broadcast %525 : vector<1x128xf32> to vector<8x128xf32>
    %527 = arith.addf %524, %526 : vector<8x128xf32>
    %528 = tpu.iota {dimensions = array<i32: 1>} : vector<8x128xi32>
    %c0_i32_128 = arith.constant 0 : i32
    %529 = vector.broadcast %c0_i32_128 : i32 to vector<8x128xi32>
    %530 = arith.cmpi eq, %528, %529 : vector<8x128xi32>
    %c1_i32_129 = arith.constant 1 : i32
    %531 = vector.broadcast %c1_i32_129 : i32 to vector<8x128xi32>
    %532 = arith.cmpi eq, %528, %531 : vector<8x128xi32>
    %533 = arith.negf %527 : vector<8x128xf32>
    %534 = math.exp %533 : vector<8x128xf32>
    %cst_130 = arith.constant 1.000000e+00 : f32
    %535 = vector.broadcast %cst_130 : f32 to vector<8x128xf32>
    %536 = arith.addf %535, %534 : vector<8x128xf32>
    %537 = arith.divf %535, %536 : vector<8x128xf32>
    %cst_131 = arith.constant 0.000000e+00 : f32
    %538 = vector.broadcast %cst_131 : f32 to vector<8x128xf32>
    %539 = arith.select %532, %537, %538 : vector<8x128xi1>, vector<8x128xf32>
    %540 = arith.select %530, %527, %539 : vector<8x128xi1>, vector<8x128xf32>
    %c0_132 = arith.constant 0 : index
    %c0_133 = arith.constant 0 : index
    %541 = vector.load %arg6[%c0_132, %c0_133] : memref<8x128xf32, #tpu.memory_space<vmem>>, vector<8x128xf32>
    tpu.vector_store %arg6[%c0_132, %c0_133], %540 {strides = array<i32>} : memref<8x128xf32, #tpu.memory_space<vmem>>, vector<8x128xf32>,
    return
  }
}

</mosaic_0001>

<bundles_post_ra>
// kernel: rmidp_forward.1
= control target key start
LH: loop header
LB: loop body
LE: loop exit
PB: predicated region body
PF: predicated region fallthrough
CT: control target
= control target key end

     0   :  { %v2784_v3 = vmov 0.0   ;;  %vm67_vm0 = vcmask 523264   ;;  %vm2787_vm1 = vmmov 0   ;;  %s3350_s1 = inlined_call_operand.vmem [shape: f32[64,256], index: 1, kind: input, shape index: {}]   ;;  %s3351_s3 = inlined_call_operand.vmem [shape: f32[64,256], index: 3, kind: input, shape index: {}]   ;;  %s3352_s0 = inlined_call_operand.vmem [shape: f32[128,64], index: 0, kind: input, shape index: {}]   ;;  %s3353_s2 = inlined_call_operand.vmem [shape: f32[1,256], index: 2, kind: input, shape index: {}]   ;;  %s3354_s4 = inlined_call_operand.vmem [shape: f32[64,128], index: 4, kind: input, shape index: {}]   ;;  %s3355_s5 = inlined_call_operand.vmem [shape: f32[1,128], index: 5, kind: input, shape index: {}]   ;;  %s3356_s6 = inlined_call_operand.vmem [shape: f32[8,128], index: 6, kind: output, shape index: {}]  }
   0x1   :  { %v40_v0 = vld [vmem:[%s3350_s1 + $0x8] sm:$0xff]  ;;  %v42_v1 = vld [vmem:[%s3350_s1 + $0x18] sm:$0xff]  ;;  %v39_v2 = vld [vmem:[%s3350_s1] sm:$0xff]  ;;  %180 = vmatprep.mubr.f32.mxu1 %v2784_v3  ;;  %932 = vmatprep.mubr.f32.mxu0 %v2784_v3 }
   0x2   :  { %v2268_v4 = vpack.c.bf16 %v42_v1, %v40_v0  ;;  %v41_v5 = vld [vmem:[%s3350_s1 + $0x10] sm:$0xff]  ;;  %v44_v6 = vld [vmem:[%s3350_s1 + $0x28] sm:$0xff]  ;;  %v46_v7 = vld [vmem:[%s3350_s1 + $0x38] sm:$0xff] }
   0x3   :  { %v2270_v8 = vpack.c.bf16 %v41_v5, %v39_v2  ;;  %v2272_v9 = vpack.c.bf16 %v46_v7, %v44_v6  ;;  %v43_v10 = vld [vmem:[%s3350_s1 + $0x20] sm:$0xff]  ;;  %v45_v11 = vld [vmem:[%s3350_s1 + $0x30] sm:$0xff]  ;;  %v48_v12 = vld [vmem:[%s3350_s1 + $0x48] sm:$0xff] }
   0x4   :  { %2269 = vmatprep.subr.bf16.mxu1 %v2268_v4  ;;  %v50_v13 = vld [vmem:[%s3350_s1 + $0x58] sm:$0xff]  ;;  %v2274_v14 = vpack.c.bf16 %v45_v11, %v43_v10  ;;  %v47_v15 = vld [vmem:[%s3350_s1 + $0x40] sm:$0xff]  ;;  %v49_v16 = vld [vmem:[%s3350_s1 + $0x50] sm:$0xff] }
   0x5   :  { %2271 = vmatpush1.bf16.msra.mxu1 %v2270_v8  ;;  %v2276_v17 = vpack.c.bf16 %v50_v13, %v48_v12  ;;  %v52_v18 = vld [vmem:[%s3350_s1 + $0x68] sm:$0xff]  ;;  %v54_v19 = vld [vmem:[%s3350_s1 + $0x78] sm:$0xff]  ;;  %v309_v22 = vld [vmem:[%s3351_s3] sm:$0xff]  ;;  %v2278_v25 = vpack.c.bf16 %v49_v16, %v47_v15 }
   0x6   :  { %2273 = vmatprep.subr.bf16.mxu1 %v2272_v9  ;;  %v310_v20 = vld [vmem:[%s3351_s3 + $0x8] sm:$0xff]  ;;  %v312_v21 = vld [vmem:[%s3351_s3 + $0x18] sm:$0xff]  ;;  %v311_v23 = vld [vmem:[%s3351_s3 + $0x10] sm:$0xff]  ;;  %v2280_v30 = vpack.c.bf16 %v54_v19, %v52_v18  ;;  %v57_v18 = vlaneseq }
   0x7   :  { %v2879_v24 = vpack.c.bf16 %v312_v21, %v310_v20  ;;  %v51_v26 = vld [vmem:[%s3350_s1 + $0x60] sm:$0xff]  ;;  %v2884_v27 = vpack.c.bf16 %v311_v23, %v309_v22  ;;  %v314_v28 = vld [vmem:[%s3351_s3 + $0x28] sm:$0xff]  ;;  %v316_v29 = vld [vmem:[%s3351_s3 + $0x38] sm:$0xff] }
   0x8   :  { %v53_v31 = vld [vmem:[%s3350_s1 + $0x70] sm:$0xff]  ;;  %v2895_v32 = vpack.c.bf16 %v316_v29, %v314_v28  ;;  %v313_v33 = vld [vmem:[%s3351_s3 + $0x20] sm:$0xff]  ;;  %v318_v35 = vld [vmem:[%s3351_s3 + $0x48] sm:$0xff]  ;;  %v58_v21 = vshrl.u32 %v57_v18, 7 }
   0x9   :  { %2275 = vmatpush1.bf16.msra.mxu1 %v2274_v14  ;;  %v315_v34 = vld [vmem:[%s3351_s3 + $0x30] sm:$0xff]  ;;  %2365 = vmatprep.subr.bf16.mxu0 %v2879_v24  ;;  %v320_v36 = vld [vmem:[%s3351_s3 + $0x58] sm:$0xff]  ;;  %v2282_v37 = vpack.c.bf16 %v53_v31, %v51_v26  ;;  %v317_v40 = vld [vmem:[%s3351_s3 + $0x40] sm:$0xff] }
   0xa   :  { %2277 = vmatprep.subr.bf16.mxu1 %v2276_v17  ;;  %2367 = vmatpush1.bf16.msra.mxu0 %v2884_v27  ;;  %v2912_v38 = vpack.c.bf16 %v315_v34, %v313_v33  ;;  %v2914_v39 = vpack.c.bf16 %v320_v36, %v318_v35  ;;  %v319_v41 = vld [vmem:[%s3351_s3 + $0x50] sm:$0xff]  ;;  %v322_v42 = vld [vmem:[%s3351_s3 + $0x68] sm:$0xff]  ;;  %v324_v43 = vld [vmem:[%s3351_s3 + $0x78] sm:$0xff]  ;;  %v63_v28 = vsub.s32 1, %v58_v21 }
   0xb   :  { %2369 = vmatprep.subr.bf16.mxu0 %v2895_v32  ;;  %v23_v44 = vld [vmem:[%s3352_s0] sm:$0xff]  ;;  %v2933_v45 = vpack.c.bf16 %v319_v41, %v317_v40  ;;  %v2936_v46 = vpack.c.bf16 %v324_v43, %v322_v42  ;;  %v323_v48 = vld [vmem:[%s3351_s3 + $0x70] sm:$0xff]  ;;  %v24_v49 = vld [vmem:[%s3352_s0 + $0x8] sm:$0xff] }
   0xc   :  { %v321_v47 = vld [vmem:[%s3351_s3 + $0x60] sm:$0xff]  ;;  %v25_v51 = vld [vmem:[%s3352_s0 + $0x10] sm:$0xff]  ;;  %v26_v52 = vld [vmem:[%s3352_s0 + $0x18] sm:$0xff] }
   0xd   :  { %2279 = vmatpush1.bf16.msra.mxu1 %v2278_v25  ;;  %v2952_v50 = vpack.c.bf16 %v323_v48, %v321_v47  ;;  %v27_v53 = vld [vmem:[%s3352_s0 + $0x20] sm:$0xff]  ;;  %v28_v54 = vld [vmem:[%s3352_s0 + $0x28] sm:$0xff]  ;;  %v29_v55 = vld [vmem:[%s3352_s0 + $0x30] sm:$0xff]  ;;  %v59_v25 = vsub.s32 0, %v58_v21 }
   0xe   :  { %2281 = vmatprep.subr.bf16.mxu1 %v2280_v30  ;;  %2371 = vmatpush1.bf16.msra.mxu0 %v2912_v38  ;;  %v30_v56 = vld [vmem:[%s3352_s0 + $0x38] sm:$0xff]  ;;  %v31_v57 = vld [vmem:[%s3352_s0 + $0x40] sm:$0xff]  ;;  %v32_v58 = vld [vmem:[%s3352_s0 + $0x48] sm:$0xff] }
   0xf   :  { %2373 = vmatprep.subr.bf16.mxu0 %v2914_v39  ;;  %v33_v59 = vld [vmem:[%s3352_s0 + $0x50] sm:$0xff]  ;;  %v34_v60 = vld [vmem:[%s3352_s0 + $0x58] sm:$0xff]  ;;  %v35_v61 = vld [vmem:[%s3352_s0 + $0x60] sm:$0xff] }
  0x10   :  { %v36_v62 = vld [vmem:[%s3352_s0 + $0x68] sm:$0xff]  ;;  %v37_v63 = vld [vmem:[%s3352_s0 + $0x70] sm:$0xff]  ;;  %v38_v0 = vld [vmem:[%s3352_s0 + $0x78] sm:$0xff] }
  0x11   :  { %2283 = vmatpush1.bf16.msra.mxu1 %v2282_v37  ;;  %v55_v26 = vld [vmem:[%s3353_s2] sm:$0x3]  ;;  %s2785_s2 = smov 64  }
  0x12   :  { %2285 = vmatprep.subr.bf16.mxu1 %v2879_v24  ;;  %2375 = vmatpush1.bf16.msra.mxu0 %v2933_v45  ;;  %v3093_v31 = vrot.slane %v55_v26, %v59_v25  ;;  %v3095_v33 = vrot.slane %v55_v26, %v63_v28 }
  0x13   :  { %2377 = vmatprep.subr.bf16.mxu0 %v2936_v46 }
  0x14   :  { %2158 = vmatmul.mubr.msk.f32.vlgmr.msra.gmra.mrb[0].mxu1 %vm67_vm0, %v23_v44 }
  0x15   :  { %2287 = vmatpush1.bf16.msra.mxu1 %v2884_v27  ;;  %186 = vmatprep.mubr.f32.mxu1 %v2784_v3 }
  0x16   :  { %2289 = vmatprep.subr.bf16.mxu1 %v2895_v32  ;;  %2379 = vmatpush1.bf16.msra.mxu0 %v2952_v50 }
  0x17   :  { %2381 = vmatprep.subr.bf16.mxu0 %v2879_v24 }
  0x18   :  { %2159 = vmatmul.mubr.msk.f32.gmra.mrb[2].mxu1 %vm67_vm0, %v24_v49 }
  0x19   :  { %192 = vmatprep.mubr.f32.mxu1 %v2784_v3  ;;  %2291 = vmatpush1.bf16.msra.mxu1 %v2912_v38 }
  0x1a   :  { %2293 = vmatprep.subr.bf16.mxu1 %v2914_v39 }
  0x1c   :  { %2160 = vmatmul.mubr.msk.f32.gmra.mrb[4].mxu1 %vm67_vm0, %v25_v51 }
  0x1d   :  { %198 = vmatprep.mubr.f32.mxu1 %v2784_v3  ;;  %2295 = vmatpush1.bf16.msra.mxu1 %v2933_v45 }
  0x1e   :  { %2297 = vmatprep.subr.bf16.mxu1 %v2936_v46 }
  0x20   :  { %2161 = vmatmul.mubr.msk.f32.gmra.mrb[6].mxu1 %vm67_vm0, %v26_v52 }
  0x21   :  { %204 = vmatprep.mubr.f32.mxu1 %v2784_v3  ;;  %2299 = vmatpush1.bf16.msra.mxu1 %v2952_v50 }
  0x22   :  { %2301 = vmatprep.subr.bf16.mxu1 %v2879_v24 }
  0x24   :  { %2162 = vmatmul.mubr.msk.f32.gmra.mrb[8].mxu1 %vm67_vm0, %v27_v53 }
  0x25   :  { %210 = vmatprep.mubr.f32.mxu1 %v2784_v3 }
  0x28   :  { %2163 = vmatmul.mubr.msk.f32.gmra.mrb[10].mxu1 %vm67_vm0, %v28_v54 }
  0x29   :  { %216 = vmatprep.mubr.f32.mxu1 %v2784_v3 }
  0x2c   :  { %2164 = vmatmul.mubr.msk.f32.gmra.mrb[12].mxu1 %vm67_vm0, %v29_v55 }
  0x2d   :  { %222 = vmatprep.mubr.f32.mxu1 %v2784_v3 }
  0x30   :  { %2165 = vmatmul.mubr.msk.f32.gmra.mrb[14].mxu1 %vm67_vm0, %v30_v56 }
  0x31   :  { %228 = vmatprep.mubr.f32.mxu1 %v2784_v3 }
  0x34   :  { %2166 = vmatmul.mubr.msk.f32.gmra.mrb[16].mxu1 %vm67_vm0, %v31_v57 }
  0x35   :  { %234 = vmatprep.mubr.f32.mxu1 %v2784_v3 }
  0x38   :  { %2167 = vmatmul.mubr.msk.f32.gmra.mrb[18].mxu1 %vm67_vm0, %v32_v58 }
  0x39   :  { %240 = vmatprep.mubr.f32.mxu1 %v2784_v3 }
  0x3c   :  { %2168 = vmatmul.mubr.msk.f32.gmra.mrb[20].mxu1 %vm67_vm0, %v33_v59 }
  0x3d   :  { %246 = vmatprep.mubr.f32.mxu1 %v2784_v3 }
  0x40   :  { %2169 = vmatmul.mubr.msk.f32.gmra.mrb[22].mxu1 %vm67_vm0, %v34_v60 }
  0x41   :  { %252 = vmatprep.mubr.f32.mxu1 %v2784_v3 }
  0x44   :  { %2170 = vmatmul.mubr.msk.f32.gmra.mrb[24].mxu1 %vm67_vm0, %v35_v61 }
  0x45   :  { %258 = vmatprep.mubr.f32.mxu1 %v2784_v3 }
  0x48   :  { %2171 = vmatmul.mubr.msk.f32.gmra.mrb[26].mxu1 %vm67_vm0, %v36_v62 }
  0x49   :  { %264 = vmatprep.mubr.f32.mxu1 %v2784_v3 }
  0x4c   :  { %2172 = vmatmul.mubr.msk.f32.gmra.mrb[28].mxu1 %vm67_vm0, %v37_v63 }
  0x4d   :  { %270 = vmatprep.mubr.f32.mxu1 %v2784_v3 }
  0x50   :  { %2173 = vmatmul.mubr.msk.f32.gmra.mrb[30].mxu1 %vm67_vm0, %v38_v0 }
  0x51   :  { %397 = vmatprep.mubr.f32.mxu1 %v2784_v3 }
  0x54   :  { %398 = vmatmul.mubr.f32.vlgmr.msra.gmra.mrb[0].mxu1 %v2784_v3 }
  0x55   :  { %2303 = vmatpush1.bf16.msra.mxu1 %v2884_v27  ;;  %504 = vmatprep.mubr.f32.mxu1 %v2784_v3 }
  0x56   :  { %2305 = vmatprep.subr.bf16.mxu1 %v2895_v32 }
  0x59   :  { %2307 = vmatpush1.bf16.msra.mxu1 %v2912_v38 }
  0x5a   :  { %2309 = vmatprep.subr.bf16.mxu1 %v2914_v39 }
  0x5d   :  { %2311 = vmatpush1.bf16.msra.mxu1 %v2933_v45 }
  0x5e   :  { %2313 = vmatprep.subr.bf16.mxu1 %v2936_v46 }
  0x61   :  { %2315 = vmatpush1.bf16.msra.mxu1 %v2952_v50 }
  0x62   :  { %2317 = vmatprep.subr.bf16.mxu1 %v2879_v24 }
  0xfb   :  { %v3045_v1 = vpop.f32.mrb[10].mxu1 }
  0xfc   :  { %v3047_v2 = vpop.f32.mrb[11].mxu1 }
  0xff   :  { %v3049_v4 = vpop.f32.mrb[12].mxu1 }
 0x100   :  { %v3051_v5 = vpop.f32.mrb[13].mxu1 }
 0x103   :  { %v3053_v6 = vpop.f32.mrb[14].mxu1 }
 0x104   :  { %v3055_v7 = vpop.f32.mrb[15].mxu1 }
 0x107   :  { %v3057_v8 = vpop.f32.mrb[16].mxu1 }
 0x108   :  { %v3059_v9 = vpop.f32.mrb[17].mxu1 }
 0x10b   :  { %v3061_v10 = vpop.f32.mrb[18].mxu1 }
 0x10c   :  { %v3063_v11 = vpop.f32.mrb[19].mxu1 }
 0x10f   :  { %v3065_v12 = vpop.f32.mrb[20].mxu1 }
 0x110   :  { %v3067_v13 = vpop.f32.mrb[21].mxu1 }
 0x113   :  { %v3069_v14 = vpop.f32.mrb[22].mxu1 }
 0x114   :  { %v3071_v15 = vpop.f32.mrb[23].mxu1 }
 0x117   :  { %v3073_v16 = vpop.f32.mrb[24].mxu1 }
 0x118   :  { %v3075_v17 = vpop.f32.mrb[25].mxu1 }
 0x11b   :  { %v3077_v19 = vpop.f32.mrb[26].mxu1 }
 0x11c   :  { %v3079_v20 = vpop.f32.mrb[27].mxu1 }
 0x11f   :  { %v3082_v22 = vpop.f32.mrb[28].mxu1 }
 0x120   :  { %v3084_v23 = vpop.f32.mrb[29].mxu1 }
 0x123   :  { %v3089_v29 = vpop.f32.mrb[30].mxu1 }
 0x124   :  { %v3091_v30 = vpop.f32.mrb[31].mxu1 }
 0x127   :  { %v399_v34 = vpop.f32.mrb[0].mxu1 }
 0x128   :  { %v2552_v35 = vadd.f32 %v399_v34, %v3093_v31  ;;  %v401_v36 = vpop.f32.mrb[1].mxu1 }
 0x129   :  { %v2553_v37 = vadd.f32 %v401_v36, %v3095_v33 }
 0x12a   :  { %v2174_v40 = vmul.f32 -1.442695, %v2552_v35 }
 0x12b   :  { %v2175_v41 = vmul.f32 -1.442695, %v2553_v37 }
 0x12c   :  { %2620 = vpow2.f32 %v2174_v40 }
 0x12d   :  { %2622 = vpow2.f32 %v2175_v41 }
 0x136   :  { %v2621_v42 = vpop.eup %2620 }
 0x137   :  { %v2623_v43 = vpop.eup %2622  ;;  %v409_v47 = vadd.f32 1.0, %v2621_v42 }
 0x138   :  { %v415_v44 = vadd.f32 1.0, %v2623_v43 }
 0x13a   :  { %2624 = vrcp.f32 %v415_v44 }
 0x13b   :  { %2626 = vrcp.f32 %v409_v47 }
 0x144   :  { %v2625_v48 = vpop.eup %2624 }
 0x145   :  { %v418_v49 = vmul.f32 2.0, %v2625_v48  ;;  %v2627_v52 = vpop.eup %2626 }
 0x146   :  { %v420_v54 = vmul.f32 0.0, %v2627_v52 }
 0x147   :  { %v2176_v51 = vadd.f32 -1.0, %v418_v49 }
 0x149   :  { %v421_v53 = vmul.f32 %v2627_v52, %v2176_v51 }
 0x14b   :  { %423 = vrot.lane.b32.xlu0 %v421_v53, %s2785_s2 }
 0x1bd   :  { %v424_v55 = vpop.permute.xlu0 %423 }
 0x1be   :  { %v426_v56 = vadd.f32 %v424_v55, %v420_v54 }
 0x1c0   :  { %2628 = vtanh.f32 %v426_v56 }
 0x1ca   :  { %v2629_v57 = vpop.eup %2628 }
 0x1cb   :  { %v3100_v58 = vmul.f32 %v2629_v57, %v2625_v48 }
 0x1cd   :  { %436 = vrot.lane.b32.xlu0 %v3100_v58, %s2785_s2 }
 0x23f   :  { %v437_v59 = vpop.permute.xlu0 %436 }
 0x240   :  { %2177 = vmatmul.mubr.msk.f32.vlgmr.msra.gmra.mrb[2].mxu1 %vm67_vm0, %v437_v59 }
 0x241   :  { %2319 = vmatpush1.bf16.msra.mxu1 %v2884_v27  ;;  %611 = vmatprep.mubr.f32.mxu1 %v2784_v3 }
 0x242   :  { %2321 = vmatprep.subr.bf16.mxu1 %v2895_v32 }
 0x245   :  { %2323 = vmatpush1.bf16.msra.mxu1 %v2912_v38 }
 0x246   :  { %2325 = vmatprep.subr.bf16.mxu1 %v2914_v39 }
 0x249   :  { %2327 = vmatpush1.bf16.msra.mxu1 %v2933_v45 }
 0x24a   :  { %2329 = vmatprep.subr.bf16.mxu1 %v2936_v46 }
 0x24d   :  { %2331 = vmatpush1.bf16.msra.mxu1 %v2952_v50 }
 0x24e   :  { %2333 = vmatprep.subr.bf16.mxu1 %v2879_v24 }
 0x313   :  { %v506_v60 = vpop.f32.mrb[2].mxu1 }
 0x314   :  { %v2554_v61 = vadd.f32 %v506_v60, %v3093_v31  ;;  %v508_v62 = vpop.f32.mrb[3].mxu1 }
 0x315   :  { %v2555_v63 = vadd.f32 %v508_v62, %v3095_v33 }
 0x316   :  { %v2178_v0 = vmul.f32 -1.442695, %v2554_v61 }
 0x317   :  { %v2179_v21 = vmul.f32 -1.442695, %v2555_v63 }
 0x318   :  { %2630 = vpow2.f32 %v2178_v0 }
 0x319   :  { %2632 = vpow2.f32 %v2179_v21 }
 0x322   :  { %v2631_v25 = vpop.eup %2630 }
 0x323   :  { %v2633_v26 = vpop.eup %2632  ;;  %v516_v34 = vadd.f32 1.0, %v2631_v25 }
 0x324   :  { %v522_v28 = vadd.f32 1.0, %v2633_v26 }
 0x326   :  { %2634 = vrcp.f32 %v522_v28 }
 0x327   :  { %2636 = vrcp.f32 %v516_v34 }
 0x330   :  { %v2635_v35 = vpop.eup %2634 }
 0x331   :  { %v525_v36 = vmul.f32 2.0, %v2635_v35  ;;  %v2637_v40 = vpop.eup %2636 }
 0x332   :  { %v527_v42 = vmul.f32 %v2637_v40, %v426_v56 }
 0x333   :  { %v2180_v37 = vadd.f32 -1.0, %v525_v36 }
 0x335   :  { %v528_v41 = vmul.f32 %v2637_v40, %v2180_v37 }
 0x337   :  { %530 = vrot.lane.b32.xlu1 %v528_v41, %s2785_s2 }
 0x3a9   :  { %v531_v43 = vpop.permute.xlu1 %530 }
 0x3aa   :  { %v533_v44 = vadd.f32 %v531_v43, %v527_v42 }
 0x3ac   :  { %2638 = vtanh.f32 %v533_v44 }
 0x3b6   :  { %v2639_v47 = vpop.eup %2638 }
 0x3b7   :  { %v535_v48 = vmul.f32 %v2639_v47, %v2635_v35 }
 0x3b9   :  { %543 = vrot.lane.b32.xlu1 %v535_v48, %s2785_s2  ;;  %v536_v36 = vadd.f32 %v535_v48, %v3100_v58 }
 0x42b   :  { %v544_v49 = vpop.permute.xlu1 %543 }
 0x42c   :  { %2181 = vmatmul.mubr.msk.f32.vlgmr.msra.gmra.mrb[4].mxu1 %vm67_vm0, %v544_v49 }
 0x42d   :  { %2335 = vmatpush1.bf16.msra.mxu1 %v2884_v27  ;;  %718 = vmatprep.mubr.f32.mxu1 %v2784_v3 }
 0x42e   :  { %2337 = vmatprep.subr.bf16.mxu1 %v2895_v32 }
 0x431   :  { %2339 = vmatpush1.bf16.msra.mxu1 %v2912_v38 }
 0x432   :  { %2341 = vmatprep.subr.bf16.mxu1 %v2914_v39 }
 0x435   :  { %2343 = vmatpush1.bf16.msra.mxu1 %v2933_v45 }
 0x436   :  { %2345 = vmatprep.subr.bf16.mxu1 %v2936_v46 }
 0x439   :  { %2347 = vmatpush1.bf16.msra.mxu1 %v2952_v50 }
 0x43a   :  { %2349 = vmatprep.subr.bf16.mxu1 %v2879_v24 }
 0x4ff   :  { %v613_v51 = vpop.f32.mrb[4].mxu1 }
 0x500   :  { %v2556_v52 = vadd.f32 %v613_v51, %v3093_v31  ;;  %v615_v53 = vpop.f32.mrb[5].mxu1 }
 0x501   :  { %v2557_v54 = vadd.f32 %v615_v53, %v3095_v33 }
 0x502   :  { %v2182_v55 = vmul.f32 -1.442695, %v2556_v52 }
 0x503   :  { %v2183_v56 = vmul.f32 -1.442695, %v2557_v54 }
 0x504   :  { %2640 = vpow2.f32 %v2182_v55 }
 0x505   :  { %2642 = vpow2.f32 %v2183_v56 }
 0x50e   :  { %v2641_v57 = vpop.eup %2640 }
 0x50f   :  { %v2643_v59 = vpop.eup %2642  ;;  %v623_v61 = vadd.f32 1.0, %v2641_v57 }
 0x510   :  { %v629_v60 = vadd.f32 1.0, %v2643_v59 }
 0x512   :  { %2644 = vrcp.f32 %v629_v60 }
 0x513   :  { %2646 = vrcp.f32 %v623_v61 }
 0x51c   :  { %v2645_v62 = vpop.eup %2644 }
 0x51d   :  { %v632_v63 = vmul.f32 2.0, %v2645_v62  ;;  %v2647_v21 = vpop.eup %2646 }
 0x51e   :  { %v634_v26 = vmul.f32 %v2647_v21, %v533_v44 }
 0x51f   :  { %v2184_v0 = vadd.f32 -1.0, %v632_v63 }
 0x521   :  { %v635_v25 = vmul.f32 %v2647_v21, %v2184_v0 }
 0x523   :  { %637 = vrot.lane.b32.xlu0 %v635_v25, %s2785_s2 }
 0x595   :  { %v638_v28 = vpop.permute.xlu0 %637 }
 0x596   :  { %v640_v34 = vadd.f32 %v638_v28, %v634_v26 }
 0x598   :  { %2648 = vtanh.f32 %v640_v34 }
 0x5a2   :  { %v2649_v35 = vpop.eup %2648 }
 0x5a3   :  { %v642_v37 = vmul.f32 %v2649_v35, %v2645_v62 }
 0x5a5   :  { %650 = vrot.lane.b32.xlu1 %v642_v37, %s2785_s2  ;;  %v643_v40 = vadd.f32 %v642_v37, %v536_v36 }
 0x617   :  { %v651_v41 = vpop.permute.xlu1 %650 }
 0x618   :  { %2185 = vmatmul.mubr.msk.f32.vlgmr.msra.gmra.mrb[6].mxu1 %vm67_vm0, %v651_v41 }
 0x619   :  { %2351 = vmatpush1.bf16.msra.mxu1 %v2884_v27  ;;  %825 = vmatprep.mubr.f32.mxu1 %v2784_v3 }
 0x61a   :  { %2353 = vmatprep.subr.bf16.mxu1 %v2895_v32 }
 0x61d   :  { %2355 = vmatpush1.bf16.msra.mxu1 %v2912_v38 }
 0x61e   :  { %2357 = vmatprep.subr.bf16.mxu1 %v2914_v39 }
 0x621   :  { %2359 = vmatpush1.bf16.msra.mxu1 %v2933_v45 }
 0x622   :  { %2361 = vmatprep.subr.bf16.mxu1 %v2936_v46 }
 0x625   :  { %2363 = vmatpush1.bf16.msra.mxu1 %v2952_v50 }
 0x6eb   :  { %v720_v58 = vpop.f32.mrb[6].mxu1 }
 0x6ec   :  { %v2558_v42 = vadd.f32 %v720_v58, %v3093_v31  ;;  %v722_v43 = vpop.f32.mrb[7].mxu1 }
 0x6ed   :  { %v2559_v44 = vadd.f32 %v722_v43, %v3095_v33 }
 0x6ee   :  { %v2186_v47 = vmul.f32 -1.442695, %v2558_v42 }
 0x6ef   :  { %v2187_v48 = vmul.f32 -1.442695, %v2559_v44 }
 0x6f0   :  { %2650 = vpow2.f32 %v2186_v47 }
 0x6f1   :  { %2652 = vpow2.f32 %v2187_v48 }
 0x6fa   :  { %v2651_v49 = vpop.eup %2650 }
 0x6fb   :  { %v2653_v51 = vpop.eup %2652  ;;  %v730_v53 = vadd.f32 1.0, %v2651_v49 }
 0x6fc   :  { %v736_v52 = vadd.f32 1.0, %v2653_v51 }
 0x6fe   :  { %2654 = vrcp.f32 %v736_v52 }
 0x6ff   :  { %2656 = vrcp.f32 %v730_v53 }
 0x708   :  { %v2655_v54 = vpop.eup %2654 }
 0x709   :  { %v739_v55 = vmul.f32 2.0, %v2655_v54  ;;  %v2657_v57 = vpop.eup %2656 }
 0x70a   :  { %v741_v60 = vmul.f32 %v2657_v57, %v640_v34 }
 0x70b   :  { %v2188_v56 = vadd.f32 -1.0, %v739_v55 }
 0x70d   :  { %v742_v59 = vmul.f32 %v2657_v57, %v2188_v56 }
 0x70f   :  { %744 = vrot.lane.b32.xlu0 %v742_v59, %s2785_s2  ;;  %v213_v59 = vadd.f32 %v3045_v1, %v3093_v31 }
 0x781   :  { %v745_v61 = vpop.permute.xlu0 %744 }
 0x782   :  { %v747_v62 = vadd.f32 %v745_v61, %v741_v60  ;;  %v215_v60 = vadd.f32 %v3047_v2, %v3095_v33 }
 0x784   :  { %2658 = vtanh.f32 %v747_v62 }
 0x78e   :  { %v2659_v63 = vpop.eup %2658 }
 0x78f   :  { %v749_v0 = vmul.f32 %v2659_v63, %v2655_v54 }
 0x791   :  { %757 = vrot.lane.b32.xlu1 %v749_v0, %s2785_s2  ;;  %v750_v21 = vadd.f32 %v749_v0, %v643_v40 }
 0x803   :  { %v758_v25 = vpop.permute.xlu1 %757 }
 0x804   :  { %2189 = vmatmul.mubr.msk.f32.vlgmr.msra.gmra.mrb[8].mxu1 %vm67_vm0, %v758_v25 }
 0x805   :  { %2265 = vmatprep.mubr.msk.f32.mxu1 %vm2787_vm1, %v2784_v3 }
 0x8d7   :  { %v827_v26 = vpop.f32.mrb[8].mxu1 }
 0x8d8   :  { %v2560_v28 = vadd.f32 %v827_v26, %v3093_v31  ;;  %v829_v35 = vpop.f32.mrb[9].mxu1 }
 0x8d9   :  { %v2561_v36 = vadd.f32 %v829_v35, %v3095_v33 }
 0x8da   :  { %v2190_v37 = vmul.f32 -1.442695, %v2560_v28 }
 0x8db   :  { %v2191_v41 = vmul.f32 -1.442695, %v2561_v36 }
 0x8dc   :  { %2660 = vpow2.f32 %v2190_v37 }
 0x8dd   :  { %2662 = vpow2.f32 %v2191_v41 }
 0x8e6   :  { %v2661_v34 = vpop.eup %2660 }
 0x8e7   :  { %v2663_v58 = vpop.eup %2662  ;;  %v837_v43 = vadd.f32 1.0, %v2661_v34 }
 0x8e8   :  { %v843_v42 = vadd.f32 1.0, %v2663_v58 }
 0x8ea   :  { %2664 = vrcp.f32 %v843_v42 }
 0x8eb   :  { %2666 = vrcp.f32 %v837_v43 }
 0x8f4   :  { %v2665_v40 = vpop.eup %2664 }
 0x8f5   :  { %v846_v44 = vmul.f32 2.0, %v2665_v40  ;;  %v2667_v48 = vpop.eup %2666 }
 0x8f6   :  { %v848_v51 = vmul.f32 %v2667_v48, %v747_v62 }
 0x8f7   :  { %v2192_v47 = vadd.f32 -1.0, %v846_v44 }
 0x8f9   :  { %v849_v49 = vmul.f32 %v2667_v48, %v2192_v47 }
 0x8fb   :  { %851 = vrot.lane.b32.xlu0 %v849_v49, %s2785_s2  ;;  %v219_v49 = vadd.f32 %v3049_v4, %v3093_v31 }
 0x96d   :  { %v852_v52 = vpop.permute.xlu0 %851 }
 0x96e   :  { %v854_v53 = vadd.f32 %v852_v52, %v848_v51  ;;  %v221_v51 = vadd.f32 %v3051_v5, %v3095_v33 }
 0x970   :  { %2668 = vtanh.f32 %v854_v53 }
 0x97a   :  { %v2669_v54 = vpop.eup %2668 }
 0x97b   :  { %v856_v55 = vmul.f32 %v2669_v54, %v2665_v40 }
 0x97d   :  { %864 = vrot.lane.b32.xlu1 %v856_v55, %s2785_s2  ;;  %v857_v56 = vadd.f32 %v856_v55, %v750_v21 }
 0x9ef   :  { %v865_v57 = vpop.permute.xlu1 %864 }
 0x9f0   :  { %2193 = vmatmul.mubr.msk.f32.vlgmr.msra.gmra.mrb[0].mxu0 %vm67_vm0, %v865_v57 }
 0x9f1   :  { %2383 = vmatpush1.bf16.msra.mxu0 %v2884_v27  ;;  %1039 = vmatprep.mubr.f32.mxu0 %v2784_v3 }
 0x9f2   :  { %2385 = vmatprep.subr.bf16.mxu0 %v2895_v32 }
 0x9f5   :  { %2387 = vmatpush1.bf16.msra.mxu0 %v2912_v38 }
 0x9f6   :  { %2389 = vmatprep.subr.bf16.mxu0 %v2914_v39 }
 0x9f9   :  { %2391 = vmatpush1.bf16.msra.mxu0 %v2933_v45 }
 0x9fa   :  { %2393 = vmatprep.subr.bf16.mxu0 %v2936_v46 }
 0x9fd   :  { %2395 = vmatpush1.bf16.msra.mxu0 %v2952_v50 }
 0x9fe   :  { %2397 = vmatprep.subr.bf16.mxu0 %v2879_v24 }
 0xac3   :  { %v934_v61 = vpop.f32.mrb[0].mxu0 }
 0xac4   :  { %v939_v62 = vadd.f32 %v934_v61, %v213_v59  ;;  %v936_v63 = vpop.f32.mrb[1].mxu0 }
 0xac5   :  { %v940_v0 = vadd.f32 %v936_v63, %v215_v60 }
 0xac6   :  { %v2194_v21 = vmul.f32 -1.442695, %v939_v62 }
 0xac7   :  { %v2195_v25 = vmul.f32 -1.442695, %v940_v0 }
 0xac8   :  { %2670 = vpow2.f32 %v2194_v21 }
 0xac9   :  { %2672 = vpow2.f32 %v2195_v25 }
 0xad2   :  { %v2671_v26 = vpop.eup %2670 }
 0xad3   :  { %v2673_v28 = vpop.eup %2672  ;;  %v944_v36 = vadd.f32 1.0, %v2671_v26 }
 0xad4   :  { %v950_v35 = vadd.f32 1.0, %v2673_v28 }
 0xad6   :  { %2674 = vrcp.f32 %v950_v35 }
 0xad7   :  { %2676 = vrcp.f32 %v944_v36 }
 0xae0   :  { %v2675_v37 = vpop.eup %2674 }
 0xae1   :  { %v953_v41 = vmul.f32 2.0, %v2675_v37  ;;  %v2677_v34 = vpop.eup %2676 }
 0xae2   :  { %v955_v2 = vmul.f32 %v2677_v34, %v854_v53 }
 0xae3   :  { %v2196_v1 = vadd.f32 -1.0, %v953_v41 }
 0xae5   :  { %v956_v58 = vmul.f32 %v2677_v34, %v2196_v1  ;;  %v225_v1 = vadd.f32 %v3053_v6, %v3093_v31  ;;  %v227_v34 = vadd.f32 %v3055_v7, %v3095_v33 }
 0xae7   :  { %958 = vrot.lane.b32.xlu0 %v956_v58, %s2785_s2 }
 0xb59   :  { %v959_v42 = vpop.permute.xlu0 %958 }
 0xb5a   :  { %v961_v43 = vadd.f32 %v959_v42, %v955_v2 }
 0xb5c   :  { %2678 = vtanh.f32 %v961_v43 }
 0xb66   :  { %v2679_v40 = vpop.eup %2678 }
 0xb67   :  { %v963_v44 = vmul.f32 %v2679_v40, %v2675_v37 }
 0xb69   :  { %971 = vrot.lane.b32.xlu1 %v963_v44, %s2785_s2  ;;  %v964_v47 = vadd.f32 %v963_v44, %v857_v56 }
 0xbdb   :  { %v972_v48 = vpop.permute.xlu1 %971 }
 0xbdc   :  { %2197 = vmatmul.mubr.msk.f32.vlgmr.msra.gmra.mrb[2].mxu0 %vm67_vm0, %v972_v48 }
 0xbdd   :  { %2399 = vmatpush1.bf16.msra.mxu0 %v2884_v27  ;;  %1146 = vmatprep.mubr.f32.mxu0 %v2784_v3 }
 0xbde   :  { %2401 = vmatprep.subr.bf16.mxu0 %v2895_v32 }
 0xbe1   :  { %2403 = vmatpush1.bf16.msra.mxu0 %v2912_v38 }
 0xbe2   :  { %2405 = vmatprep.subr.bf16.mxu0 %v2914_v39 }
 0xbe5   :  { %2407 = vmatpush1.bf16.msra.mxu0 %v2933_v45 }
 0xbe6   :  { %2409 = vmatprep.subr.bf16.mxu0 %v2936_v46 }
 0xbe9   :  { %2411 = vmatpush1.bf16.msra.mxu0 %v2952_v50 }
 0xbea   :  { %2413 = vmatprep.subr.bf16.mxu0 %v2879_v24 }
 0xcaf   :  { %v1041_v52 = vpop.f32.mrb[2].mxu0 }
 0xcb0   :  { %v1046_v53 = vadd.f32 %v1041_v52, %v219_v49  ;;  %v1043_v54 = vpop.f32.mrb[3].mxu0 }
 0xcb1   :  { %v1047_v55 = vadd.f32 %v1043_v54, %v221_v51 }
 0xcb2   :  { %v2198_v56 = vmul.f32 -1.442695, %v1046_v53 }
 0xcb3   :  { %v2199_v57 = vmul.f32 -1.442695, %v1047_v55 }
 0xcb4   :  { %2680 = vpow2.f32 %v2198_v56 }
 0xcb5   :  { %2682 = vpow2.f32 %v2199_v57 }
 0xcbe   :  { %v2681_v59 = vpop.eup %2680 }
 0xcbf   :  { %v2683_v60 = vpop.eup %2682  ;;  %v1051_v62 = vadd.f32 1.0, %v2681_v59 }
 0xcc0   :  { %v1057_v61 = vadd.f32 1.0, %v2683_v60 }
 0xcc2   :  { %2684 = vrcp.f32 %v1057_v61 }
 0xcc3   :  { %2686 = vrcp.f32 %v1051_v62 }
 0xccc   :  { %v2685_v63 = vpop.eup %2684 }
 0xccd   :  { %v1060_v0 = vmul.f32 2.0, %v2685_v63  ;;  %v2687_v21 = vpop.eup %2686 }
 0xcce   :  { %v1062_v5 = vmul.f32 %v2687_v21, %v961_v43 }
 0xccf   :  { %v2200_v4 = vadd.f32 -1.0, %v1060_v0  ;;  %v233_v0 = vadd.f32 %v3059_v9, %v3095_v33 }
 0xcd1   :  { %v1063_v25 = vmul.f32 %v2687_v21, %v2200_v4 }
 0xcd3   :  { %1065 = vrot.lane.b32.xlu0 %v1063_v25, %s2785_s2 }
 0xd45   :  { %v1066_v26 = vpop.permute.xlu0 %1065 }
 0xd46   :  { %v1068_v28 = vadd.f32 %v1066_v26, %v1062_v5 }
 0xd48   :  { %2688 = vtanh.f32 %v1068_v28 }
 0xd52   :  { %v2689_v35 = vpop.eup %2688 }
 0xd53   :  { %v1070_v36 = vmul.f32 %v2689_v35, %v2685_v63  ;;  %v231_v63 = vadd.f32 %v3057_v8, %v3093_v31 }
 0xd55   :  { %1078 = vrot.lane.b32.xlu1 %v1070_v36, %s2785_s2  ;;  %v1071_v37 = vadd.f32 %v1070_v36, %v964_v47 }
 0xdc7   :  { %v1079_v41 = vpop.permute.xlu1 %1078 }
 0xdc8   :  { %2201 = vmatmul.mubr.msk.f32.vlgmr.msra.gmra.mrb[4].mxu0 %vm67_vm0, %v1079_v41 }
 0xdc9   :  { %2415 = vmatpush1.bf16.msra.mxu0 %v2884_v27  ;;  %1253 = vmatprep.mubr.f32.mxu0 %v2784_v3 }
 0xdca   :  { %2417 = vmatprep.subr.bf16.mxu0 %v2895_v32 }
 0xdcd   :  { %2419 = vmatpush1.bf16.msra.mxu0 %v2912_v38 }
 0xdce   :  { %2421 = vmatprep.subr.bf16.mxu0 %v2914_v39 }
 0xdd1   :  { %2423 = vmatpush1.bf16.msra.mxu0 %v2933_v45 }
 0xdd2   :  { %2425 = vmatprep.subr.bf16.mxu0 %v2936_v46 }
 0xdd5   :  { %2427 = vmatpush1.bf16.msra.mxu0 %v2952_v50 }
 0xdd6   :  { %2429 = vmatprep.subr.bf16.mxu0 %v2879_v24 }
 0xe9b   :  { %v1148_v58 = vpop.f32.mrb[4].mxu0 }
 0xe9c   :  { %v1153_v2 = vadd.f32 %v1148_v58, %v225_v1  ;;  %v1150_v42 = vpop.f32.mrb[5].mxu0 }
 0xe9d   :  { %v1154_v43 = vadd.f32 %v1150_v42, %v227_v34 }
 0xe9e   :  { %v2202_v40 = vmul.f32 -1.442695, %v1153_v2 }
 0xe9f   :  { %v2203_v44 = vmul.f32 -1.442695, %v1154_v43 }
 0xea0   :  { %2690 = vpow2.f32 %v2202_v40 }
 0xea1   :  { %2692 = vpow2.f32 %v2203_v44 }
 0xeaa   :  { %v2691_v47 = vpop.eup %2690 }
 0xeab   :  { %v2693_v48 = vpop.eup %2692  ;;  %v1158_v51 = vadd.f32 1.0, %v2691_v47 }
 0xeac   :  { %v1164_v49 = vadd.f32 1.0, %v2693_v48 }
 0xeae   :  { %2694 = vrcp.f32 %v1164_v49  ;;  %v237_v49 = vadd.f32 %v3061_v10, %v3093_v31 }
 0xeaf   :  { %2696 = vrcp.f32 %v1158_v51  ;;  %v239_v51 = vadd.f32 %v3063_v11, %v3095_v33 }
 0xeb8   :  { %v2695_v52 = vpop.eup %2694 }
 0xeb9   :  { %v1167_v53 = vmul.f32 2.0, %v2695_v52  ;;  %v2697_v54 = vpop.eup %2696 }
 0xeba   :  { %v1169_v7 = vmul.f32 %v2697_v54, %v1068_v28 }
 0xebb   :  { %v2204_v6 = vadd.f32 -1.0, %v1167_v53 }
 0xebd   :  { %v1170_v55 = vmul.f32 %v2697_v54, %v2204_v6 }
 0xebf   :  { %1172 = vrot.lane.b32.xlu0 %v1170_v55, %s2785_s2 }
 0xf31   :  { %v1173_v56 = vpop.permute.xlu0 %1172 }
 0xf32   :  { %v1175_v57 = vadd.f32 %v1173_v56, %v1169_v7 }
 0xf34   :  { %2698 = vtanh.f32 %v1175_v57 }
 0xf3e   :  { %v2699_v59 = vpop.eup %2698 }
 0xf3f   :  { %v1177_v60 = vmul.f32 %v2699_v59, %v2695_v52 }
 0xf41   :  { %1185 = vrot.lane.b32.xlu1 %v1177_v60, %s2785_s2  ;;  %v1178_v61 = vadd.f32 %v1177_v60, %v1071_v37 }
 0xfb3   :  { %v1186_v62 = vpop.permute.xlu1 %1185 }
 0xfb4   :  { %2205 = vmatmul.mubr.msk.f32.vlgmr.msra.gmra.mrb[6].mxu0 %vm67_vm0, %v1186_v62 }
 0xfb5   :  { %2431 = vmatpush1.bf16.msra.mxu0 %v2884_v27  ;;  %1360 = vmatprep.mubr.f32.mxu0 %v2784_v3 }
 0xfb6   :  { %2433 = vmatprep.subr.bf16.mxu0 %v2895_v32 }
 0xfb9   :  { %2435 = vmatpush1.bf16.msra.mxu0 %v2912_v38 }
 0xfba   :  { %2437 = vmatprep.subr.bf16.mxu0 %v2914_v39 }
 0xfbd   :  { %2439 = vmatpush1.bf16.msra.mxu0 %v2933_v45 }
 0xfbe   :  { %2441 = vmatprep.subr.bf16.mxu0 %v2936_v46 }
 0xfc1   :  { %2443 = vmatpush1.bf16.msra.mxu0 %v2952_v50 }
 0xfc2   :  { %2445 = vmatprep.subr.bf16.mxu0 %v2879_v24 }
0x1087   :  { %v1255_v4 = vpop.f32.mrb[6].mxu0 }
0x1088   :  { %v1260_v21 = vadd.f32 %v1255_v4, %v231_v63  ;;  %v1257_v25 = vpop.f32.mrb[7].mxu0 }
0x1089   :  { %v1261_v5 = vadd.f32 %v1257_v25, %v233_v0 }
0x108a   :  { %v2206_v26 = vmul.f32 -1.442695, %v1260_v21 }
0x108b   :  { %v2207_v28 = vmul.f32 -1.442695, %v1261_v5 }
0x108c   :  { %2700 = vpow2.f32 %v2206_v26 }
0x108d   :  { %2702 = vpow2.f32 %v2207_v28 }
0x1096   :  { %v2701_v35 = vpop.eup %2700 }
0x1097   :  { %v2703_v36 = vpop.eup %2702  ;;  %v1265_v41 = vadd.f32 1.0, %v2701_v35  ;;  %v243_v35 = vadd.f32 %v3065_v12, %v3093_v31 }
0x1098   :  { %v1271_v37 = vadd.f32 1.0, %v2703_v36  ;;  %v245_v36 = vadd.f32 %v3067_v13, %v3095_v33 }
0x109a   :  { %2704 = vrcp.f32 %v1271_v37 }
0x109b   :  { %2706 = vrcp.f32 %v1265_v41 }
0x10a4   :  { %v2705_v1 = vpop.eup %2704 }
0x10a5   :  { %v1274_v34 = vmul.f32 2.0, %v2705_v1  ;;  %v2707_v58 = vpop.eup %2706 }
0x10a6   :  { %v1276_v9 = vmul.f32 %v2707_v58, %v1175_v57 }
0x10a7   :  { %v2208_v8 = vadd.f32 -1.0, %v1274_v34 }
0x10a9   :  { %v1277_v2 = vmul.f32 %v2707_v58, %v2208_v8 }
0x10ab   :  { %1279 = vrot.lane.b32.xlu0 %v1277_v2, %s2785_s2 }
0x111d   :  { %v1280_v42 = vpop.permute.xlu0 %1279 }
0x111e   :  { %v1282_v43 = vadd.f32 %v1280_v42, %v1276_v9 }
0x1120   :  { %2708 = vtanh.f32 %v1282_v43 }
0x112a   :  { %v2709_v40 = vpop.eup %2708 }
0x112b   :  { %v1284_v44 = vmul.f32 %v2709_v40, %v2705_v1 }
0x112d   :  { %1292 = vrot.lane.b32.xlu1 %v1284_v44, %s2785_s2  ;;  %v1285_v47 = vadd.f32 %v1284_v44, %v1178_v61 }
0x119f   :  { %v1293_v48 = vpop.permute.xlu1 %1292 }
0x11a0   :  { %2209 = vmatmul.mubr.msk.f32.vlgmr.msra.gmra.mrb[8].mxu0 %vm67_vm0, %v1293_v48 }
0x11a1   :  { %2447 = vmatpush1.bf16.msra.mxu0 %v2884_v27  ;;  %1467 = vmatprep.mubr.f32.mxu0 %v2784_v3 }
0x11a2   :  { %2449 = vmatprep.subr.bf16.mxu0 %v2895_v32 }
0x11a5   :  { %2451 = vmatpush1.bf16.msra.mxu0 %v2912_v38 }
0x11a6   :  { %2453 = vmatprep.subr.bf16.mxu0 %v2914_v39 }
0x11a9   :  { %2455 = vmatpush1.bf16.msra.mxu0 %v2933_v45 }
0x11aa   :  { %2457 = vmatprep.subr.bf16.mxu0 %v2936_v46 }
0x11ad   :  { %2459 = vmatpush1.bf16.msra.mxu0 %v2952_v50 }
0x11ae   :  { %2461 = vmatprep.subr.bf16.mxu0 %v2879_v24 }
0x1273   :  { %v1362_v52 = vpop.f32.mrb[8].mxu0 }
0x1274   :  { %v1367_v53 = vadd.f32 %v1362_v52, %v237_v49  ;;  %v1364_v6 = vpop.f32.mrb[9].mxu0 }
0x1275   :  { %v1368_v54 = vadd.f32 %v1364_v6, %v239_v51 }
0x1276   :  { %v2210_v55 = vmul.f32 -1.442695, %v1367_v53 }
0x1277   :  { %v2211_v7 = vmul.f32 -1.442695, %v1368_v54 }
0x1278   :  { %2710 = vpow2.f32 %v2210_v55  ;;  %v249_v55 = vadd.f32 %v3069_v14, %v3093_v31 }
0x1279   :  { %2712 = vpow2.f32 %v2211_v7  ;;  %v251_v7 = vadd.f32 %v3071_v15, %v3095_v33 }
0x1282   :  { %v2711_v56 = vpop.eup %2710 }
0x1283   :  { %v2713_v57 = vpop.eup %2712  ;;  %v1372_v60 = vadd.f32 1.0, %v2711_v56 }
0x1284   :  { %v1378_v59 = vadd.f32 1.0, %v2713_v57 }
0x1286   :  { %2714 = vrcp.f32 %v1378_v59 }
0x1287   :  { %2716 = vrcp.f32 %v1372_v60 }
0x1290   :  { %v2715_v61 = vpop.eup %2714 }
0x1291   :  { %v1381_v62 = vmul.f32 2.0, %v2715_v61  ;;  %v2717_v63 = vpop.eup %2716 }
0x1292   :  { %v1383_v11 = vmul.f32 %v2717_v63, %v1282_v43 }
0x1293   :  { %v2212_v10 = vadd.f32 -1.0, %v1381_v62 }
0x1295   :  { %v1384_v0 = vmul.f32 %v2717_v63, %v2212_v10 }
0x1297   :  { %1386 = vrot.lane.b32.xlu0 %v1384_v0, %s2785_s2 }
0x1309   :  { %v1387_v4 = vpop.permute.xlu0 %1386 }
0x130a   :  { %v1389_v21 = vadd.f32 %v1387_v4, %v1383_v11 }
0x130c   :  { %2718 = vtanh.f32 %v1389_v21 }
0x1316   :  { %v2719_v25 = vpop.eup %2718 }
0x1317   :  { %v1391_v5 = vmul.f32 %v2719_v25, %v2715_v61 }
0x1319   :  { %1399 = vrot.lane.b32.xlu1 %v1391_v5, %s2785_s2  ;;  %v1392_v26 = vadd.f32 %v1391_v5, %v1285_v47 }
0x138b   :  { %v1400_v28 = vpop.permute.xlu1 %1399 }
0x138c   :  { %2213 = vmatmul.mubr.msk.f32.vlgmr.msra.gmra.mrb[10].mxu0 %vm67_vm0, %v1400_v28 }
0x138d   :  { %2463 = vmatpush1.bf16.msra.mxu0 %v2884_v27  ;;  %1574 = vmatprep.mubr.f32.mxu0 %v2784_v3 }
0x138e   :  { %2465 = vmatprep.subr.bf16.mxu0 %v2895_v32 }
0x1391   :  { %2467 = vmatpush1.bf16.msra.mxu0 %v2912_v38 }
0x1392   :  { %2469 = vmatprep.subr.bf16.mxu0 %v2914_v39 }
0x1395   :  { %2471 = vmatpush1.bf16.msra.mxu0 %v2933_v45 }
0x1396   :  { %2473 = vmatprep.subr.bf16.mxu0 %v2936_v46 }
0x1399   :  { %2475 = vmatpush1.bf16.msra.mxu0 %v2952_v50 }
0x139a   :  { %2477 = vmatprep.subr.bf16.mxu0 %v2879_v24 }
0x145f   :  { %v1469_v37 = vpop.f32.mrb[10].mxu0 }
0x1460   :  { %v1474_v41 = vadd.f32 %v1469_v37, %v243_v35  ;;  %v1471_v1 = vpop.f32.mrb[11].mxu0 }
0x1461   :  { %v1475_v34 = vadd.f32 %v1471_v1, %v245_v36  ;;  %v255_v1 = vadd.f32 %v3073_v16, %v3093_v31 }
0x1462   :  { %v2214_v8 = vmul.f32 -1.442695, %v1474_v41 }
0x1463   :  { %v2215_v58 = vmul.f32 -1.442695, %v1475_v34  ;;  %v257_v34 = vadd.f32 %v3075_v17, %v3095_v33 }
0x1464   :  { %2720 = vpow2.f32 %v2214_v8 }
0x1465   :  { %2722 = vpow2.f32 %v2215_v58 }
0x146e   :  { %v2721_v2 = vpop.eup %2720 }
0x146f   :  { %v2723_v9 = vpop.eup %2722  ;;  %v1479_v43 = vadd.f32 1.0, %v2721_v2 }
0x1470   :  { %v1485_v42 = vadd.f32 1.0, %v2723_v9 }
0x1472   :  { %2724 = vrcp.f32 %v1485_v42 }
0x1473   :  { %2726 = vrcp.f32 %v1479_v43 }
0x147c   :  { %v2725_v40 = vpop.eup %2724 }
0x147d   :  { %v1488_v44 = vmul.f32 2.0, %v2725_v40  ;;  %v2727_v47 = vpop.eup %2726 }
0x147e   :  { %v1490_v13 = vmul.f32 %v2727_v47, %v1389_v21 }
0x147f   :  { %v2216_v12 = vadd.f32 -1.0, %v1488_v44 }
0x1481   :  { %v1491_v48 = vmul.f32 %v2727_v47, %v2216_v12 }
0x1483   :  { %1493 = vrot.lane.b32.xlu0 %v1491_v48, %s2785_s2 }
0x14f5   :  { %v1494_v49 = vpop.permute.xlu0 %1493 }
0x14f6   :  { %v1496_v51 = vadd.f32 %v1494_v49, %v1490_v13 }
0x14f8   :  { %2728 = vtanh.f32 %v1496_v51 }
0x1502   :  { %v2729_v52 = vpop.eup %2728 }
0x1503   :  { %v1498_v53 = vmul.f32 %v2729_v52, %v2725_v40 }
0x1505   :  { %1506 = vrot.lane.b32.xlu1 %v1498_v53, %s2785_s2  ;;  %v1499_v6 = vadd.f32 %v1498_v53, %v1392_v26 }
0x1577   :  { %v1507_v54 = vpop.permute.xlu1 %1506 }
0x1578   :  { %2217 = vmatmul.mubr.msk.f32.vlgmr.msra.gmra.mrb[12].mxu0 %vm67_vm0, %v1507_v54 }
0x1579   :  { %2479 = vmatpush1.bf16.msra.mxu0 %v2884_v27  ;;  %1681 = vmatprep.mubr.f32.mxu0 %v2784_v3 }
0x157a   :  { %2481 = vmatprep.subr.bf16.mxu0 %v2895_v32 }
0x157d   :  { %2483 = vmatpush1.bf16.msra.mxu0 %v2912_v38 }
0x157e   :  { %2485 = vmatprep.subr.bf16.mxu0 %v2914_v39 }
0x1581   :  { %2487 = vmatpush1.bf16.msra.mxu0 %v2933_v45 }
0x1582   :  { %2489 = vmatprep.subr.bf16.mxu0 %v2936_v46 }
0x1585   :  { %2491 = vmatpush1.bf16.msra.mxu0 %v2952_v50 }
0x1586   :  { %2493 = vmatprep.subr.bf16.mxu0 %v2879_v24 }
0x164b   :  { %v1576_v56 = vpop.f32.mrb[12].mxu0 }
0x164c   :  { %v1581_v57 = vadd.f32 %v1576_v56, %v249_v55  ;;  %v1578_v59 = vpop.f32.mrb[13].mxu0  ;;  %v261_v56 = vadd.f32 %v3077_v19, %v3093_v31 }
0x164d   :  { %v1582_v60 = vadd.f32 %v1578_v59, %v251_v7 }
0x164e   :  { %v2218_v61 = vmul.f32 -1.442695, %v1581_v57  ;;  %v263_v57 = vadd.f32 %v3079_v20, %v3095_v33 }
0x164f   :  { %v2219_v62 = vmul.f32 -1.442695, %v1582_v60 }
0x1650   :  { %2730 = vpow2.f32 %v2218_v61 }
0x1651   :  { %2732 = vpow2.f32 %v2219_v62 }
0x165a   :  { %v2731_v10 = vpop.eup %2730 }
0x165b   :  { %v2733_v63 = vpop.eup %2732  ;;  %v1586_v11 = vadd.f32 1.0, %v2731_v10 }
0x165c   :  { %v1592_v0 = vadd.f32 1.0, %v2733_v63 }
0x165e   :  { %2734 = vrcp.f32 %v1592_v0 }
0x165f   :  { %2736 = vrcp.f32 %v1586_v11 }
0x1668   :  { %v2735_v4 = vpop.eup %2734 }
0x1669   :  { %v1595_v21 = vmul.f32 2.0, %v2735_v4  ;;  %v2737_v25 = vpop.eup %2736 }
0x166a   :  { %v1597_v15 = vmul.f32 %v2737_v25, %v1496_v51 }
0x166b   :  { %v2220_v14 = vadd.f32 -1.0, %v1595_v21 }
0x166d   :  { %v1598_v5 = vmul.f32 %v2737_v25, %v2220_v14 }
0x166f   :  { %1600 = vrot.lane.b32.xlu0 %v1598_v5, %s2785_s2 }
0x16e1   :  { %v1601_v26 = vpop.permute.xlu0 %1600 }
0x16e2   :  { %v1603_v28 = vadd.f32 %v1601_v26, %v1597_v15 }
0x16e4   :  { %2738 = vtanh.f32 %v1603_v28 }
0x16ee   :  { %v2739_v35 = vpop.eup %2738 }
0x16ef   :  { %v1605_v36 = vmul.f32 %v2739_v35, %v2735_v4 }
0x16f1   :  { %1613 = vrot.lane.b32.xlu1 %v1605_v36, %s2785_s2  ;;  %v1606_v37 = vadd.f32 %v1605_v36, %v1499_v6 }
0x1763   :  { %v1614_v41 = vpop.permute.xlu1 %1613 }
0x1764   :  { %2221 = vmatmul.mubr.msk.f32.vlgmr.msra.gmra.mrb[14].mxu0 %vm67_vm0, %v1614_v41  ;;  %v267_v41 = vadd.f32 %v3082_v22, %v3093_v31 }
0x1765   :  { %2495 = vmatpush1.bf16.msra.mxu0 %v2884_v27  ;;  %1788 = vmatprep.mubr.f32.mxu0 %v2784_v3 }
0x1766   :  { %2497 = vmatprep.subr.bf16.mxu0 %v2895_v32 }
0x1769   :  { %2499 = vmatpush1.bf16.msra.mxu0 %v2912_v38 }
0x176a   :  { %2501 = vmatprep.subr.bf16.mxu0 %v2914_v39 }
0x176d   :  { %2503 = vmatpush1.bf16.msra.mxu0 %v2933_v45 }
0x176e   :  { %2505 = vmatprep.subr.bf16.mxu0 %v2936_v46 }
0x1771   :  { %2507 = vmatpush1.bf16.msra.mxu0 %v2952_v50 }
0x1772   :  { %2509 = vmatprep.subr.bf16.mxu0 %v2879_v24 }
0x1837   :  { %v1683_v8 = vpop.f32.mrb[14].mxu0 }
0x1838   :  { %v1688_v58 = vadd.f32 %v1683_v8, %v255_v1  ;;  %v1685_v2 = vpop.f32.mrb[15].mxu0 }
0x1839   :  { %v1689_v9 = vadd.f32 %v1685_v2, %v257_v34 }
0x183a   :  { %v2222_v42 = vmul.f32 -1.442695, %v1688_v58 }
0x183b   :  { %v2223_v43 = vmul.f32 -1.442695, %v1689_v9 }
0x183c   :  { %2740 = vpow2.f32 %v2222_v42 }
0x183d   :  { %2742 = vpow2.f32 %v2223_v43 }
0x1846   :  { %v2741_v40 = vpop.eup %2740 }
0x1847   :  { %v2743_v44 = vpop.eup %2742  ;;  %v1693_v47 = vadd.f32 1.0, %v2741_v40 }
0x1848   :  { %v1699_v12 = vadd.f32 1.0, %v2743_v44 }
0x184a   :  { %2744 = vrcp.f32 %v1699_v12 }
0x184b   :  { %2746 = vrcp.f32 %v1693_v47 }
0x1854   :  { %v2745_v48 = vpop.eup %2744 }
0x1855   :  { %v1702_v13 = vmul.f32 2.0, %v2745_v48  ;;  %v2747_v49 = vpop.eup %2746 }
0x1856   :  { %v1704_v17 = vmul.f32 %v2747_v49, %v1603_v28 }
0x1857   :  { %v2224_v16 = vadd.f32 -1.0, %v1702_v13 }
0x1859   :  { %v1705_v51 = vmul.f32 %v2747_v49, %v2224_v16  ;;  %v273_v16 = vadd.f32 %v3089_v29, %v3093_v31  ;;  %v275_v49 = vadd.f32 %v3091_v30, %v3095_v33  ;;  %v2786_v30 = vmov 0.0|0.0  }
0x185a   :  { %2540 = vmatprep.subr.bf16.mxu1 %v2786_v30 }
0x185b   :  { %1707 = vrot.lane.b32.xlu0 %v1705_v51, %s2785_s2 }
0x18cd   :  { %v1708_v52 = vpop.permute.xlu0 %1707 }
0x18ce   :  { %v1710_v53 = vadd.f32 %v1708_v52, %v1704_v17 }
0x18d0   :  { %2748 = vtanh.f32 %v1710_v53 }
0x18da   :  { %v2749_v6 = vpop.eup %2748 }
0x18db   :  { %v1712_v54 = vmul.f32 %v2749_v6, %v2745_v48 }
0x18dd   :  { %1720 = vrot.lane.b32.xlu1 %v1712_v54, %s2785_s2  ;;  %v1713_v55 = vadd.f32 %v1712_v54, %v1606_v37 }
0x194f   :  { %v1721_v7 = vpop.permute.xlu1 %1720 }
0x1950   :  { %2225 = vmatmul.mubr.msk.f32.vlgmr.msra.gmra.mrb[16].mxu0 %vm67_vm0, %v1721_v7 }
0x1951   :  { %2511 = vmatpush1.bf16.msra.mxu0 %v2884_v27  ;;  %1895 = vmatprep.mubr.f32.mxu0 %v2784_v3 }
0x1952   :  { %2513 = vmatprep.subr.bf16.mxu0 %v2895_v32 }
0x1955   :  { %2515 = vmatpush1.bf16.msra.mxu0 %v2912_v38 }
0x1956   :  { %2517 = vmatprep.subr.bf16.mxu0 %v2914_v39 }
0x1959   :  { %2519 = vmatpush1.bf16.msra.mxu0 %v2933_v45 }
0x195a   :  { %2521 = vmatprep.subr.bf16.mxu0 %v2936_v46 }
0x195d   :  { %2523 = vmatpush1.bf16.msra.mxu0 %v2952_v50 }
0x195e   :  { %2525 = vmatprep.subr.bf16.mxu0 %v2879_v24 }
0x1a23   :  { %v1790_v59 = vpop.f32.mrb[16].mxu0 }
0x1a24   :  { %v1795_v60 = vadd.f32 %v1790_v59, %v261_v56  ;;  %v1792_v61 = vpop.f32.mrb[17].mxu0 }
0x1a25   :  { %v1796_v62 = vadd.f32 %v1792_v61, %v263_v57 }
0x1a26   :  { %v2226_v10 = vmul.f32 -1.442695, %v1795_v60 }
0x1a27   :  { %v2227_v63 = vmul.f32 -1.442695, %v1796_v62  ;;  %v2037_v62 = vld [vmem:[%s3354_s4 + $0x8] sm:$0xff] }
0x1a28   :  { %2750 = vpow2.f32 %v2226_v10  ;;  %v2038_v10 = vld [vmem:[%s3354_s4 + $0x10] sm:$0xff] }
0x1a29   :  { %2752 = vpow2.f32 %v2227_v63 }
0x1a32   :  { %v2751_v0 = vpop.eup %2750 }
0x1a33   :  { %v2753_v11 = vpop.eup %2752  ;;  %v1800_v21 = vadd.f32 1.0, %v2751_v0  ;;  %v2039_v0 = vld [vmem:[%s3354_s4 + $0x18] sm:$0xff] }
0x1a34   :  { %v1806_v4 = vadd.f32 1.0, %v2753_v11  ;;  %v2544_v11 = vpack.c.bf16 %v2039_v0, %v2038_v10 }
0x1a36   :  { %2754 = vrcp.f32 %v1806_v4  ;;  %v2040_v4 = vld [vmem:[%s3354_s4 + $0x20] sm:$0xff] }
0x1a37   :  { %2756 = vrcp.f32 %v1800_v21  ;;  %v2041_v21 = vld [vmem:[%s3354_s4 + $0x28] sm:$0xff] }
0x1a40   :  { %v2755_v24 = vpop.eup %2754 }
0x1a41   :  { %v1809_v14 = vmul.f32 2.0, %v2755_v24  ;;  %v2757_v25 = vpop.eup %2756 }
0x1a42   :  { %v1811_v20 = vmul.f32 %v2757_v25, %v1710_v53 }
0x1a43   :  { %v2228_v19 = vadd.f32 -1.0, %v1809_v14  ;;  %v2043_v14 = vld [vmem:[%s3354_s4 + $0x38] sm:$0xff] }
0x1a45   :  { %v1812_v5 = vmul.f32 %v2757_v25, %v2228_v19 }
0x1a47   :  { %1814 = vrot.lane.b32.xlu0 %v1812_v5, %s2785_s2 }
0x1ab9   :  { %v1815_v15 = vpop.permute.xlu0 %1814 }
0x1aba   :  { %v1817_v26 = vadd.f32 %v1815_v15, %v1811_v20 }
0x1abc   :  { %2758 = vtanh.f32 %v1817_v26 }
0x1ac6   :  { %v2759_v28 = vpop.eup %2758 }
0x1ac7   :  { %v1819_v35 = vmul.f32 %v2759_v28, %v2755_v24  ;;  %v2547_v24 = vpack.c.bf16 %v2041_v21, %v2040_v4 }
0x1ac9   :  { %1827 = vrot.lane.b32.xlu1 %v1819_v35, %s2785_s2  ;;  %v1820_v36 = vadd.f32 %v1819_v35, %v1713_v55 }
0x1b3b   :  { %v1828_v37 = vpop.permute.xlu1 %1827 }
0x1b3c   :  { %2229 = vmatmul.mubr.msk.f32.vlgmr.msra.gmra.mrb[18].mxu0 %vm67_vm0, %v1828_v37  ;;  %v2237_v37 = vld [vmem:[%s3355_s5] ss:$0 sm:$0xff] }
0x1b3d   :  { %2527 = vmatpush1.bf16.msra.mxu0 %v2884_v27  ;;  %2002 = vmatprep.mubr.f32.mxu0 %v2784_v3  ;;  %v269_v27 = vadd.f32 %v3084_v23, %v3095_v33  ;;  %v2036_v33 = vld [vmem:[%s3354_s4] sm:$0xff]  ;;  %v2042_v3 = vld [vmem:[%s3354_s4 + $0x30] sm:$0xff] }
0x1b3e   :  { %2529 = vmatprep.subr.bf16.mxu0 %v2895_v32  ;;  %v2541_v63 = vpack.c.bf16 %v2037_v62, %v2036_v33  ;;  %v2550_v19 = vpack.c.bf16 %v2043_v14, %v2042_v3 }
0x1b40   :  { %2542 = vmatpush3.bf16.msra.mxu1 %v2541_v63 }
0x1b41   :  { %2531 = vmatpush1.bf16.msra.mxu0 %v2912_v38  ;;  %2543 = vmatprep.subr.bf16.mxu1 %v2786_v30 }
0x1b42   :  { %2533 = vmatprep.subr.bf16.mxu0 %v2914_v39 }
0x1b44   :  { %2545 = vmatpush3.bf16.msra.mxu1 %v2544_v11 }
0x1b45   :  { %2535 = vmatpush1.bf16.msra.mxu0 %v2933_v45  ;;  %2546 = vmatprep.subr.bf16.mxu1 %v2786_v30 }
0x1b46   :  { %2537 = vmatprep.subr.bf16.mxu0 %v2936_v46 }
0x1b48   :  { %2548 = vmatpush3.bf16.msra.mxu1 %v2547_v24 }
0x1b49   :  { %2539 = vmatpush1.bf16.msra.mxu0 %v2952_v50  ;;  %2549 = vmatprep.subr.bf16.mxu1 %v2786_v30 }
0x1b4c   :  { %2551 = vmatpush3.bf16.msra.mxu1 %v2550_v19 }
0x1c0f   :  { %v1897_v1 = vpop.f32.mrb[18].mxu0 }
0x1c10   :  { %v1902_v34 = vadd.f32 %v1897_v1, %v267_v41  ;;  %v1899_v8 = vpop.f32.mrb[19].mxu0 }
0x1c11   :  { %v1903_v32 = vadd.f32 %v1899_v8, %v269_v27 }
0x1c12   :  { %v2230_v58 = vmul.f32 -1.442695, %v1902_v34 }
0x1c13   :  { %v2231_v38 = vmul.f32 -1.442695, %v1903_v32 }
0x1c14   :  { %2760 = vpow2.f32 %v2230_v58  ;;  %v2127_v58 = vand.u32 127, %v57_v18 }
0x1c15   :  { %2762 = vpow2.f32 %v2231_v38 }
0x1c16   :  { %vm2129_vm2 = vcmp.eq.s32.totalorder %v2127_v58, 1  ;;  %vm2128_vm3 = vcmp.eq.s32.totalorder %v2127_v58, 0 }
0x1c1e   :  { %v2761_v39 = vpop.eup %2760 }
0x1c1f   :  { %v2763_v45 = vpop.eup %2762  ;;  %v1907_v46 = vadd.f32 1.0, %v2761_v39 }
0x1c20   :  { %v1913_v2 = vadd.f32 1.0, %v2763_v45 }
0x1c22   :  { %2764 = vrcp.f32 %v1913_v2 }
0x1c23   :  { %2766 = vrcp.f32 %v1907_v46 }
0x1c2c   :  { %v2765_v50 = vpop.eup %2764 }
0x1c2d   :  { %v1916_v9 = vmul.f32 2.0, %v2765_v50  ;;  %v2767_v42 = vpop.eup %2766 }
0x1c2e   :  { %v1918_v23 = vmul.f32 %v2767_v42, %v1817_v26 }
0x1c2f   :  { %v2232_v22 = vadd.f32 -1.0, %v1916_v9 }
0x1c31   :  { %v1919_v43 = vmul.f32 %v2767_v42, %v2232_v22 }
0x1c33   :  { %1921 = vrot.lane.b32.xlu0 %v1919_v43, %s2785_s2 }
0x1ca5   :  { %v1922_v40 = vpop.permute.xlu0 %1921 }
0x1ca6   :  { %v1924_v44 = vadd.f32 %v1922_v40, %v1918_v23 }
0x1ca8   :  { %2768 = vtanh.f32 %v1924_v44 }
0x1cb2   :  { %v2769_v12 = vpop.eup %2768 }
0x1cb3   :  { %v1926_v47 = vmul.f32 %v2769_v12, %v2765_v50 }
0x1cb5   :  { %1934 = vrot.lane.b32.xlu1 %v1926_v47, %s2785_s2  ;;  %v1927_v48 = vadd.f32 %v1926_v47, %v1820_v36 }
0x1d27   :  { %v1935_v13 = vpop.permute.xlu1 %1934 }
0x1d28   :  { %2233 = vmatmul.mubr.msk.f32.vlgmr.msra.gmra.mrb[20].mxu0 %vm67_vm0, %v1935_v13 }
0x1dfb   :  { %v2004_v51 = vpop.f32.mrb[20].mxu0 }
0x1dfc   :  { %v2009_v17 = vadd.f32 %v2004_v51, %v273_v16  ;;  %v2006_v52 = vpop.f32.mrb[21].mxu0 }
0x1dfd   :  { %v2010_v53 = vadd.f32 %v2006_v52, %v275_v49 }
0x1dfe   :  { %v2234_v6 = vmul.f32 -1.442695, %v2009_v17 }
0x1dff   :  { %v2235_v54 = vmul.f32 -1.442695, %v2010_v53 }
0x1e00   :  { %2770 = vpow2.f32 %v2234_v6 }
0x1e01   :  { %2772 = vpow2.f32 %v2235_v54 }
0x1e0a   :  { %v2771_v55 = vpop.eup %2770 }
0x1e0b   :  { %v2773_v7 = vpop.eup %2772  ;;  %v2014_v57 = vadd.f32 1.0, %v2771_v55 }
0x1e0c   :  { %v2020_v56 = vadd.f32 1.0, %v2773_v7 }
0x1e0e   :  { %2774 = vrcp.f32 %v2020_v56 }
0x1e0f   :  { %2776 = vrcp.f32 %v2014_v57 }
0x1e18   :  { %v2775_v59 = vpop.eup %2774 }
0x1e19   :  { %v2023_v60 = vmul.f32 2.0, %v2775_v59  ;;  %v2777_v31 = vpop.eup %2776 }
0x1e1a   :  { %v2025_v25 = vmul.f32 %v2777_v31, %v1924_v44 }
0x1e1b   :  { %v2236_v29 = vadd.f32 -1.0, %v2023_v60 }
0x1e1d   :  { %v2026_v61 = vmul.f32 %v2777_v31, %v2236_v29 }
0x1e1f   :  { %2028 = vrot.lane.b32.xlu0 %v2026_v61, %s2785_s2 }
0x1e91   :  { %v2029_v5 = vpop.permute.xlu0 %2028 }
0x1e92   :  { %v2031_v20 = vadd.f32 %v2029_v5, %v2025_v25 }
0x1e94   :  { %2778 = vtanh.f32 %v2031_v20 }
0x1e9e   :  { %v2779_v15 = vpop.eup %2778 }
0x1e9f   :  { %v2033_v26 = vmul.f32 %v2779_v15, %v2775_v59 }
0x1ea1   :  { %v2034_v28 = vadd.f32 %v2033_v26, %v1927_v48 }
0x1ea3   :  { %v2035_v35 = vmul.f32 0.0625, %v2034_v28 }
0x1ea5   :  { %2052 = vrot.lane.b32.xlu1 %v2035_v35, %s2785_s2 }
0x1f17   :  { %v2053_v36 = vpop.permute.xlu1 %2052 }
0x1f18   :  { %2266 = vmatmul.mubr.msk.f32.vlgmr.msra.gmra.mrb[32].mxu1 %vm67_vm0, %v2053_v36 }
0x1feb   :  { %v2122_v41 = vpop.f32.mrb[32].mxu1 }
0x1fec   :  { %v2123_v27 = vadd.f32 %v2237_v37, %v2122_v41  ;;  %v2267_v1 = vpop.f32.mrb[33].mxu1 }
0x1fee   :  { %v2239_v34 = vmul.f32 -1.442695, %v2123_v27 }
0x1ff0   :  { %2780 = vpow2.f32 %v2239_v34 }
0x1ffa   :  { %v2781_v8 = vpop.eup %2780 }
0x1ffb   :  { %v2133_v32 = vadd.f32 1.0, %v2781_v8 }
0x1ffd   :  { %2782 = vrcp.f32 %v2133_v32 }
0x2007   :  { %v2783_v38 = vpop.eup %2782 }
0x2008   :  { %v2136_v39 = vsel %vm2129_vm2, %v2783_v38, 0.0 }
0x2009   :  { %v2137_v45 = vsel %vm2128_vm3, %v2123_v27, %v2136_v39 }
0x200a   :  { %2138 = vst [vmem:[%s3356_s6] sm:$0xff] %v2137_v45 }

</bundles_post_ra>
